<compile_context>
chip_gen: v5e
topology: v5e:2x2
jax: 0.10.0
libtpu: 0.0.40
codegen_flags: <defaults>
</compile_context>

<pallas_src>
import math

import jax
import jax.numpy as jnp
from jax.experimental import pallas as pl
from jax.experimental.pallas import tpu as pltpu


def _make_kernel(*, tq, num_heads, head_dim, eps):
    def layernorm(h, g, b):
        mu = jnp.mean(h, axis=-1, keepdims=True)
        var = jnp.mean(jnp.square(h - mu), axis=-1, keepdims=True)
        return (h - mu) * jax.lax.rsqrt(var + eps) * g + b

    def kernel(x_ref,
               ln1g_ref, ln1b_ref,
               wq_ref, bq_ref, wk_ref, bk_ref, wv_ref, bv_ref, wo_ref, bo_ref,
               ln2g_ref, ln2b_ref,
               wfc_ref, bfc_ref, wproj_ref, bproj_ref,
               o_ref,
               h1_sc, k_sc, v_sc):
        qi = pl.program_id(1)

        # ---- per-batch prologue (qi == 0): LN1 over the full sequence, then
        #      fused full-width K / V projections into lane-packed scratch. ---
        @pl.when(qi == 0)
        def _build_kv():
            h1_full = layernorm(x_ref[...].astype(jnp.float32),
                                ln1g_ref[...], ln1b_ref[...]).astype(jnp.bfloat16)
            h1_sc[...] = h1_full                                       # (S, H) bf16
            k_sc[...] = (jnp.dot(h1_full, wk_ref[...],
                                 preferred_element_type=jnp.float32)
                         + bk_ref[...]).astype(jnp.bfloat16)           # (S, H)
            v_sc[...] = (jnp.dot(h1_full, wv_ref[...],
                                 preferred_element_type=jnp.float32)
                         + bv_ref[...]).astype(jnp.bfloat16)           # (S, H)

        # ---- attention for this q-tile ----------------------------------------
        q_start = pl.multiple_of(qi * tq, tq)
        x_tile = x_ref[pl.ds(q_start, tq), :].astype(jnp.float32)      # (tq, H) f32
        h1 = h1_sc[pl.ds(q_start, tq), :]                              # (tq, H) bf16

        # Fused Q projection; 1/sqrt(head_dim) already folded into wq / bq.
        q_all = (jnp.dot(h1, wq_ref[...], preferred_element_type=jnp.float32)
                 + bq_ref[...]).astype(jnp.bfloat16)                   # (tq, H)
        k_all = k_sc[...]                                              # (S, H) bf16
        v_all = v_sc[...]

        # Per-head softmax(QK^T)V with static lane slices (heads on lanes).
        ctx_parts = []
        for h in range(num_heads):
            lo = h * head_dim
            hi = lo + head_dim
            qh = q_all[:, lo:hi]                                       # (tq, hd)
            kh = k_all[:, lo:hi]                                       # (S, hd)
            vh = v_all[:, lo:hi]
            s = jax.lax.dot_general(qh, kh, (((1,), (1,)), ((), ())),
                                    preferred_element_type=jnp.float32)  # (tq, S)
            s = s - jnp.max(s, axis=-1, keepdims=True)
            p = jnp.exp(s)
            p = p * pl.reciprocal(jnp.sum(p, axis=-1, keepdims=True), approx=True)
            ctx_parts.append(jnp.dot(p.astype(jnp.bfloat16), vh,
                                     preferred_element_type=jnp.float32))  # (tq, hd)
        # Lane-packed ctx (heads along lanes) -> single fused output projection.
        ctx = jnp.concatenate(ctx_parts, axis=-1).astype(jnp.bfloat16)     # (tq, H)
        attn = (jnp.dot(ctx, wo_ref[...], preferred_element_type=jnp.float32)
                + bo_ref[...])

        x1 = x_tile + attn                                             # residual 1

        # ---- MLP (f32 LN / gelu, bf16 matmul operands) -------------------------
        h2 = layernorm(x1, ln2g_ref[...], ln2b_ref[...]).astype(jnp.bfloat16)
        ff = (jnp.dot(h2, wfc_ref[...], preferred_element_type=jnp.float32)
              + bfc_ref[...])
        ff = jax.nn.gelu(ff, approximate=True).astype(jnp.bfloat16)
        mlp = (jnp.dot(ff, wproj_ref[...], preferred_element_type=jnp.float32)
               + bproj_ref[...])

        o_ref[...] = (x1 + mlp).astype(o_ref.dtype)                    # residual 2

    return kernel


def _prepare_params(p, num_heads):
    """Host-side (one-time) repack: split QKV, bf16 cast, fold attention scale."""
    H = p["ln1_g"].shape[-1]
    hd = H // num_heads
    scale = 1.0 / math.sqrt(hd)
    bf16 = jnp.bfloat16
    f32 = jnp.float32

    wq, wk, wv = jnp.split(p["wqkv"], 3, axis=1)          # each (H, H)
    bq, bk, bv = jnp.split(p["bqkv"], 3, axis=1)          # each (1, H)

    return {
        "ln1_g": p["ln1_g"].astype(f32), "ln1_b": p["ln1_b"].astype(f32),
        "wq": (wq * scale).astype(bf16), "bq": (bq * scale).astype(f32),
        "wk": wk.astype(bf16), "bk": bk.astype(f32),
        "wv": wv.astype(bf16), "bv": bv.astype(f32),
        "wo": p["wo"].astype(bf16), "bo": p["bo"].astype(f32),
        "ln2_g": p["ln2_g"].astype(f32), "ln2_b": p["ln2_b"].astype(f32),
        "wfc": p["wfc"].astype(bf16), "bfc": p["bfc"].astype(f32),
        "wproj": p["wproj"].astype(bf16), "bproj": p["bproj"].astype(f32),
    }


def _vmem_limit_bytes():
    """Generation-aware VMEM limit: ~75% of physical (48 MiB on v7x, 96 MiB on
    v5e/v6e), with a conservative fallback if the query is unavailable."""
    cap = None
    try:
        cap = getattr(pltpu.get_tpu_info(), "vmem_capacity_bytes", None)
    except Exception:
        cap = None
    if not cap:
        return 48 * 1024 * 1024          # safe on every generation (v7x = 64 MiB)
    return min(int(cap) * 3 // 4, 112 * 1024 * 1024)


def _run(x, w, *, num_heads, eps, q_tile):
    B, S, H = x.shape
    I = w["wfc"].shape[1]
    hd = H // num_heads
    nq = S // q_tile

    kernel = _make_kernel(tq=q_tile, num_heads=num_heads, head_dim=hd, eps=eps)

    def wspec(shape):
        zeros = (0,) * len(shape)
        return pl.BlockSpec(shape, lambda b, qi: zeros)

    in_specs = [
        pl.BlockSpec((pl.Squeezed(), S, H), lambda b, qi: (b, 0, 0)),   # x (full seq)
        wspec((1, H)), wspec((1, H)),                                   # ln1 g/b
        wspec((H, H)), wspec((1, H)),                                   # wq, bq
        wspec((H, H)), wspec((1, H)),                                   # wk, bk
        wspec((H, H)), wspec((1, H)),                                   # wv, bv
        wspec((H, H)), wspec((1, H)),                                   # wo, bo
        wspec((1, H)), wspec((1, H)),                                   # ln2 g/b
        wspec((H, I)), wspec((1, I)),                                   # mlp fc
        wspec((I, H)), wspec((1, H)),                                   # mlp proj
    ]
    out_specs = pl.BlockSpec((pl.Squeezed(), q_tile, H), lambda b, qi: (b, qi, 0))

    cost = pl.CostEstimate(
        flops=int(8 * B * S * H * H + 4 * B * S * S * H + 4 * B * S * H * I),
        transcendentals=int(B * S * (num_heads * S + I)),
        bytes_accessed=int(8 * B * S * H + 2 * (4 * H * H + 2 * H * I)),
    )

    return pl.pallas_call(
        kernel,
        out_shape=jax.ShapeDtypeStruct((B, S, H), x.dtype),
        grid_spec=pltpu.PrefetchScalarGridSpec(
            num_scalar_prefetch=0,
            grid=(B, nq),
            in_specs=in_specs,
            out_specs=out_specs,
            scratch_shapes=[
                pltpu.VMEM((S, H), jnp.bfloat16),   # post-LN1 activations
                pltpu.VMEM((S, H), jnp.bfloat16),   # K (lane-packed heads)
                pltpu.VMEM((S, H), jnp.bfloat16),   # V (lane-packed heads)
            ],
        ),
        compiler_params=pltpu.CompilerParams(
            # batch: megacore-parallel; q-tile axis sequential so the per-batch
            # h1/K/V scratch built at qi==0 stays valid for later q-tiles.
            dimension_semantics=("parallel", "arbitrary"),
            vmem_limit_bytes=_vmem_limit_bytes(),
        ),
        cost_estimate=cost,
    )(x,
      w["ln1_g"], w["ln1_b"],
      w["wq"], w["bq"], w["wk"], w["bk"], w["wv"], w["bv"], w["wo"], w["bo"],
      w["ln2_g"], w["ln2_b"],
      w["wfc"], w["bfc"], w["wproj"], w["bproj"])


def transformer_block(x, params, *, num_heads, eps=1e-5, q_tile=None):
    B, S, H = x.shape
    if q_tile is None:
        # Larger tiles amortize per-step pipeline overhead and keep stores
        # lane-dense; cap at 512 so the (tq, S) scores stay reasonable.
        q_tile = S if S <= 512 else next(
            (t for t in (512, 256, 128, 64, 32, 16, 8) if S % t == 0), S)
    assert S % q_tile == 0, "sequence length must be divisible by q_tile"
    assert H % num_heads == 0, "hidden size must be divisible by num_heads"
    w = _prepare_params(params, num_heads)
    return _run(x, w, num_heads=num_heads, eps=eps, q_tile=q_tile)


def reference_block(x, p, *, num_heads, eps=1e-5):
    """Pure-JAX (f32) reference matching the PyTorch forward semantics."""
    B, S, H = x.shape
    hd = H // num_heads

    def ln(h, g, b):
        mu = jnp.mean(h, axis=-1, keepdims=True)
        var = jnp.mean((h - mu) ** 2, axis=-1, keepdims=True)
        return (h - mu) / jnp.sqrt(var + eps) * g + b

    h1 = ln(x, p["ln1_g"], p["ln1_b"])
    qkv = h1 @ p["wqkv"] + p["bqkv"]
    q, k, v = jnp.split(qkv, 3, axis=-1)
    q = q.reshape(B, S, num_heads, hd).transpose(0, 2, 1, 3)
    k = k.reshape(B, S, num_heads, hd).transpose(0, 2, 1, 3)
    v = v.reshape(B, S, num_heads, hd).transpose(0, 2, 1, 3)
    s = jnp.einsum("bhqd,bhkd->bhqk", q, k) / math.sqrt(hd)
    p_attn = jax.nn.softmax(s, axis=-1)
    ctx = jnp.einsum("bhqk,bhkd->bhqd", p_attn, v)
    ctx = ctx.transpose(0, 2, 1, 3).reshape(B, S, H)
    attn_out = ctx @ p["wo"] + p["bo"]
    x1 = x + attn_out
    h2 = ln(x1, p["ln2_g"], p["ln2_b"])
    ff = jax.nn.gelu(h2 @ p["wfc"] + p["bfc"], approximate=True)
    return x1 + ff @ p["wproj"] + p["bproj"]


def init_params(key, hidden, intermediate):
    ks = jax.random.split(key, 6)
    s = 0.02
    return {
        "ln1_g": jnp.ones((1, hidden), jnp.float32),
        "ln1_b": jnp.zeros((1, hidden), jnp.float32),
        "wqkv": s * jax.random.normal(ks[0], (hidden, 3 * hidden), jnp.float32),
        "bqkv": jnp.zeros((1, 3 * hidden), jnp.float32),
        "wo": s * jax.random.normal(ks[1], (hidden, hidden), jnp.float32),
        "bo": jnp.zeros((1, hidden), jnp.float32),
        "ln2_g": jnp.ones((1, hidden), jnp.float32),
        "ln2_b": jnp.zeros((1, hidden), jnp.float32),
        "wfc": s * jax.random.normal(ks[2], (hidden, intermediate), jnp.float32),
        "bfc": jnp.zeros((1, intermediate), jnp.float32),
        "wproj": s * jax.random.normal(ks[3], (intermediate, hidden), jnp.float32),
        "bproj": jnp.zeros((1, hidden), jnp.float32),
    }


if __name__ == "__main__":
    B, S, H, NH = 2, 64, 32, 4
    INTERMEDIATE = 4 * H
    EPS = 1e-5

    key = jax.random.PRNGKey(0)
    kx, kp = jax.random.split(key)
    x = jax.random.normal(kx, (B, S, H), jnp.float32)
    params = init_params(kp, H, INTERMEDIATE)

    out = transformer_block(x, params, num_heads=NH, eps=EPS, q_tile=32)
    out = jax.block_until_ready(out)

    ref = reference_block(x, params, num_heads=NH, eps=EPS)
    assert out.shape == (B, S, H)
    # bf16 matmul operands with f32 accumulation -> looser tolerance than pure f32.
    assert jnp.allclose(out, ref, atol=2e-2, rtol=2e-2), "mismatch vs reference"

    print("KERNEL_OK")
</pallas_src>

<mosaic_0001>
module attributes {stable_mosaic.version = 11 : i64} {
  func.func @kernel(%arg0: i32, %arg1: i32, %arg2: memref<1x64x32xf32, #tpu.memory_space<vmem>>, %arg3: memref<1x32xf32, #tpu.memory_space<vmem>>, %arg4: memref<1x32xf32, #tpu.memory_space<vmem>>, %arg5: memref<32x32xbf16, #tpu.memory_space<vmem>>, %arg6: memref<1x32xf32, #tpu.memory_space<vmem>>, %arg7: memref<32x32xbf16, #tpu.memory_space<vmem>>, %arg8: memref<1x32xf32, #tpu.memory_space<vmem>>, %arg9: memref<32x32xbf16, #tpu.memory_space<vmem>>, %arg10: memref<1x32xf32, #tpu.memory_space<vmem>>, %arg11: memref<32x32xbf16, #tpu.memory_space<vmem>>, %arg12: memref<1x32xf32, #tpu.memory_space<vmem>>, %arg13: memref<1x32xf32, #tpu.memory_space<vmem>>, %arg14: memref<1x32xf32, #tpu.memory_space<vmem>>, %arg15: memref<32x128xbf16, #tpu.memory_space<vmem>>, %arg16: memref<1x128xf32, #tpu.memory_space<vmem>>, %arg17: memref<128x32xbf16, #tpu.memory_space<vmem>>, %arg18: memref<1x32xf32, #tpu.memory_space<vmem>>, %arg19: memref<1x32x32xf32, #tpu.memory_space<vmem>>, %arg20: memref<64x32xbf16, #tpu.memory_space<vmem>>, %arg21: memref<64x32xbf16, #tpu.memory_space<vmem>>, %arg22: memref<64x32xbf16, #tpu.memory_space<vmem>>) attributes {dimension_semantics = [#tpu.dimension_semantics<parallel>, #tpu.dimension_semantics<arbitrary>], iteration_bounds = array<i64: 2, 2>, scalar_prefetch = 0 : i64, scratch_operands = 3 : i64, tpu.core_type = #tpu.core_type<tc>, window_params = [{transform_indices = @transform_0, window_bounds = array<i64: 1, 64, 32>}, {pipeline_mode = #tpu.pipeline_mode<synchronous>, transform_indices = @transform_1, window_bounds = array<i64: 1, 32>}, {pipeline_mode = #tpu.pipeline_mode<synchronous>, transform_indices = @transform_2, window_bounds = array<i64: 1, 32>}, {pipeline_mode = #tpu.pipeline_mode<synchronous>, transform_indices = @transform_3, window_bounds = array<i64: 32, 32>}, {pipeline_mode = #tpu.pipeline_mode<synchronous>, transform_indices = @transform_4, window_bounds = array<i64: 1, 32>}, {pipeline_mode = #tpu.pipeline_mode<synchronous>, transform_indices = @transform_5, window_bounds = array<i64: 32, 32>}, {pipeline_mode = #tpu.pipeline_mode<synchronous>, transform_indices = @transform_6, window_bounds = array<i64: 1, 32>}, {pipeline_mode = #tpu.pipeline_mode<synchronous>, transform_indices = @transform_7, window_bounds = array<i64: 32, 32>}, {pipeline_mode = #tpu.pipeline_mode<synchronous>, transform_indices = @transform_8, window_bounds = array<i64: 1, 32>}, {pipeline_mode = #tpu.pipeline_mode<synchronous>, transform_indices = @transform_9, window_bounds = array<i64: 32, 32>}, {pipeline_mode = #tpu.pipeline_mode<synchronous>, transform_indices = @transform_10, window_bounds = array<i64: 1, 32>}, {pipeline_mode = #tpu.pipeline_mode<synchronous>, transform_indices = @transform_11, window_bounds = array<i64: 1, 32>}, {pipeline_mode = #tpu.pipeline_mode<synchronous>, transform_indices = @transform_12, window_bounds = array<i64: 1, 32>}, {pipeline_mode = #tpu.pipeline_mode<synchronous>, transform_indices = @transform_13, window_bounds = array<i64: 32, 128>}, {pipeline_mode = #tpu.pipeline_mode<synchronous>, transform_indices = @transform_14, window_bounds = array<i64: 1, 128>}, {pipeline_mode = #tpu.pipeline_mode<synchronous>, transform_indices = @transform_15, window_bounds = array<i64: 128, 32>}, {pipeline_mode = #tpu.pipeline_mode<synchronous>, transform_indices = @transform_16, window_bounds = array<i64: 1, 32>}, {transform_indices = @transform_17, window_bounds = array<i64: 1, 32, 32>}]} {
    %c0_i32 = arith.constant 0 : i32
    %0 = arith.cmpi eq, %arg1, %c0_i32 : i32
    %1 = arith.extui %0 : i1 to i32
    %c0_i32_0 = arith.constant 0 : i32
    %2 = arith.cmpi ne, %1, %c0_i32_0 : i32
    scf.if %2 {
      %c0_58 = arith.constant 0 : index
      %c0_59 = arith.constant 0 : index
      %c0_60 = arith.constant 0 : index
      %143 = vector.load %arg2[%c0_58, %c0_59, %c0_60] : memref<1x64x32xf32, #tpu.memory_space<vmem>>, vector<1x64x32xf32>
      %144 = vector.shape_cast %143 : vector<1x64x32xf32> to vector<64x32xf32>
      %c0_61 = arith.constant 0 : index
      %c0_62 = arith.constant 0 : index
      %145 = vector.load %arg3[%c0_61, %c0_62] : memref<1x32xf32, #tpu.memory_space<vmem>>, vector<1x32xf32>
      %c0_63 = arith.constant 0 : index
      %c0_64 = arith.constant 0 : index
      %146 = vector.load %arg4[%c0_63, %c0_64] : memref<1x32xf32, #tpu.memory_space<vmem>>, vector<1x32xf32>
      %cst_65 = arith.constant dense<0.000000e+00> : vector<64xf32>
      %147 = vector.multi_reduction <add>, %144, %cst_65 [1] : vector<64x32xf32> to vector<64xf32>
      %148 = vector.shape_cast %147 : vector<64xf32> to vector<64x1xf32>
      %cst_66 = arith.constant 3.200000e+01 : f32
      %149 = vector.broadcast %cst_66 : f32 to vector<64x1xf32>
      %150 = arith.divf %148, %149 : vector<64x1xf32>
      %151 = vector.broadcast %150 : vector<64x1xf32> to vector<64x32xf32>
      %152 = arith.subf %144, %151 : vector<64x32xf32>
      %153 = arith.mulf %152, %152 : vector<64x32xf32>
      %cst_67 = arith.constant dense<0.000000e+00> : vector<64xf32>
      %154 = vector.multi_reduction <add>, %153, %cst_67 [1] : vector<64x32xf32> to vector<64xf32>
      %155 = vector.shape_cast %154 : vector<64xf32> to vector<64x1xf32>
      %cst_68 = arith.constant 3.200000e+01 : f32
      %156 = vector.broadcast %cst_68 : f32 to vector<64x1xf32>
      %157 = arith.divf %155, %156 : vector<64x1xf32>
      %158 = vector.broadcast %150 : vector<64x1xf32> to vector<64x32xf32>
      %159 = arith.subf %144, %158 : vector<64x32xf32>
      %cst_69 = arith.constant 9.99999974E-6 : f32
      %160 = vector.broadcast %cst_69 : f32 to vector<64x1xf32>
      %161 = arith.addf %157, %160 : vector<64x1xf32>
      %162 = math.rsqrt %161 : vector<64x1xf32>
      %163 = vector.broadcast %162 : vector<64x1xf32> to vector<64x32xf32>
      %164 = arith.mulf %159, %163 : vector<64x32xf32>
      %165 = vector.broadcast %145 : vector<1x32xf32> to vector<64x32xf32>
      %166 = arith.mulf %164, %165 : vector<64x32xf32>
      %167 = vector.broadcast %146 : vector<1x32xf32> to vector<64x32xf32>
      %168 = arith.addf %166, %167 : vector<64x32xf32>
      %169 = arith.truncf %168 : vector<64x32xf32> to vector<64x32xbf16>
      %c0_70 = arith.constant 0 : index
      %c0_71 = arith.constant 0 : index
      %170 = vector.load %arg20[%c0_70, %c0_71] : memref<64x32xbf16, #tpu.memory_space<vmem>>, vector<64x32xbf16>
      tpu.vector_store %arg20[%c0_70, %c0_71], %169 {strides = array<i32>} : memref<64x32xbf16, #tpu.memory_space<vmem>>, vector<64x32xbf16>,
      %c0_72 = arith.constant 0 : index
      %c0_73 = arith.constant 0 : index
      %171 = vector.load %arg7[%c0_72, %c0_73] : memref<32x32xbf16, #tpu.memory_space<vmem>>, vector<32x32xbf16>
      %cst_74 = arith.constant dense<0.000000e+00> : vector<64x32xf32>
      %172 = tpu.matmul %169, %171, %cst_74 {dimension_numbers = #tpu.dot_dimension_numbers<[1], [0], [0], [1], [0, 0, 1, 1], [], []>} : vector<64x32xbf16>, vector<32x32xbf16>, vector<64x32xf32> -> vector<64x32xf32>
      %c0_75 = arith.constant 0 : index
      %c0_76 = arith.constant 0 : index
      %173 = vector.load %arg8[%c0_75, %c0_76] : memref<1x32xf32, #tpu.memory_space<vmem>>, vector<1x32xf32>
      %174 = vector.broadcast %173 : vector<1x32xf32> to vector<64x32xf32>
      %175 = arith.addf %172, %174 : vector<64x32xf32>
      %176 = arith.truncf %175 : vector<64x32xf32> to vector<64x32xbf16>
      %c0_77 = arith.constant 0 : index
      %c0_78 = arith.constant 0 : index
      %177 = vector.load %arg21[%c0_77, %c0_78] : memref<64x32xbf16, #tpu.memory_space<vmem>>, vector<64x32xbf16>
      tpu.vector_store %arg21[%c0_77, %c0_78], %176 {strides = array<i32>} : memref<64x32xbf16, #tpu.memory_space<vmem>>, vector<64x32xbf16>,
      %c0_79 = arith.constant 0 : index
      %c0_80 = arith.constant 0 : index
      %178 = vector.load %arg9[%c0_79, %c0_80] : memref<32x32xbf16, #tpu.memory_space<vmem>>, vector<32x32xbf16>
      %cst_81 = arith.constant dense<0.000000e+00> : vector<64x32xf32>
      %179 = tpu.matmul %169, %178, %cst_81 {dimension_numbers = #tpu.dot_dimension_numbers<[1], [0], [0], [1], [0, 0, 1, 1], [], []>} : vector<64x32xbf16>, vector<32x32xbf16>, vector<64x32xf32> -> vector<64x32xf32>
      %c0_82 = arith.constant 0 : index
      %c0_83 = arith.constant 0 : index
      %180 = vector.load %arg10[%c0_82, %c0_83] : memref<1x32xf32, #tpu.memory_space<vmem>>, vector<1x32xf32>
      %181 = vector.broadcast %180 : vector<1x32xf32> to vector<64x32xf32>
      %182 = arith.addf %179, %181 : vector<64x32xf32>
      %183 = arith.truncf %182 : vector<64x32xf32> to vector<64x32xbf16>
      %c0_84 = arith.constant 0 : index
      %c0_85 = arith.constant 0 : index
      %184 = vector.load %arg22[%c0_84, %c0_85] : memref<64x32xbf16, #tpu.memory_space<vmem>>, vector<64x32xbf16>
      tpu.vector_store %arg22[%c0_84, %c0_85], %183 {strides = array<i32>} : memref<64x32xbf16, #tpu.memory_space<vmem>>, vector<64x32xbf16>,
    } else {
    }
    %c32_i32 = arith.constant 32 : i32
    %3 = arith.muli %arg1, %c32_i32 : i32
    %4 = tpu.assume_multiple %3, 32 : i32
    %c0 = arith.constant 0 : index
    %5 = arith.index_cast %4 : i32 to index
    %c0_1 = arith.constant 0 : index
    %6 = vector.load %arg2[%c0, %5, %c0_1] : memref<1x64x32xf32, #tpu.memory_space<vmem>>, vector<1x32x32xf32>
    %7 = vector.shape_cast %6 : vector<1x32x32xf32> to vector<32x32xf32>
    %8 = arith.index_cast %4 : i32 to index
    %c0_2 = arith.constant 0 : index
    %9 = vector.load %arg20[%8, %c0_2] : memref<64x32xbf16, #tpu.memory_space<vmem>>, vector<32x32xbf16>
    %c0_3 = arith.constant 0 : index
    %c0_4 = arith.constant 0 : index
    %10 = vector.load %arg5[%c0_3, %c0_4] : memref<32x32xbf16, #tpu.memory_space<vmem>>, vector<32x32xbf16>
    %cst = arith.constant dense<0.000000e+00> : vector<32x32xf32>
    %11 = tpu.matmul %9, %10, %cst {dimension_numbers = #tpu.dot_dimension_numbers<[1], [0], [0], [1], [0, 0, 1, 1], [], []>} : vector<32x32xbf16>, vector<32x32xbf16>, vector<32x32xf32> -> vector<32x32xf32>
    %c0_5 = arith.constant 0 : index
    %c0_6 = arith.constant 0 : index
    %12 = vector.load %arg6[%c0_5, %c0_6] : memref<1x32xf32, #tpu.memory_space<vmem>>, vector<1x32xf32>
    %13 = vector.broadcast %12 : vector<1x32xf32> to vector<32x32xf32>
    %14 = arith.addf %11, %13 : vector<32x32xf32>
    %15 = arith.truncf %14 : vector<32x32xf32> to vector<32x32xbf16>
    %c0_7 = arith.constant 0 : index
    %c0_8 = arith.constant 0 : index
    %16 = vector.load %arg21[%c0_7, %c0_8] : memref<64x32xbf16, #tpu.memory_space<vmem>>, vector<64x32xbf16>
    %c0_9 = arith.constant 0 : index
    %c0_10 = arith.constant 0 : index
    %17 = vector.load %arg22[%c0_9, %c0_10] : memref<64x32xbf16, #tpu.memory_space<vmem>>, vector<64x32xbf16>
    %18 = vector.extract_strided_slice %15 {offsets = [0, 0], sizes = [32, 8], strides = [1, 1]} : vector<32x32xbf16> to vector<32x8xbf16>
    %19 = vector.extract_strided_slice %16 {offsets = [0, 0], sizes = [64, 8], strides = [1, 1]} : vector<64x32xbf16> to vector<64x8xbf16>
    %20 = vector.extract_strided_slice %17 {offsets = [0, 0], sizes = [64, 8], strides = [1, 1]} : vector<64x32xbf16> to vector<64x8xbf16>
    %cst_11 = arith.constant dense<0.000000e+00> : vector<32x64xf32>
    %21 = tpu.matmul %18, %19, %cst_11 {dimension_numbers = #tpu.dot_dimension_numbers<[1], [1], [0], [0], [0, 0, 1, 0], [], []>} : vector<32x8xbf16>, vector<64x8xbf16>, vector<32x64xf32> -> vector<32x64xf32>
    %cst_12 = arith.constant dense<0xFF800000> : vector<32xf32>
    %22 = vector.multi_reduction <maximumf>, %21, %cst_12 [1] : vector<32x64xf32> to vector<32xf32>
    %23 = vector.shape_cast %22 : vector<32xf32> to vector<32x1xf32>
    %24 = vector.broadcast %23 : vector<32x1xf32> to vector<32x64xf32>
    %25 = arith.subf %21, %24 : vector<32x64xf32>
    %26 = math.exp %25 : vector<32x64xf32>
    %cst_13 = arith.constant dense<0.000000e+00> : vector<32xf32>
    %27 = vector.multi_reduction <add>, %26, %cst_13 [1] : vector<32x64xf32> to vector<32xf32>
    %28 = vector.shape_cast %27 : vector<32xf32> to vector<32x1xf32>
    %29 = tpu.reciprocal %28 {approx = true} : vector<32x1xf32> -> vector<32x1xf32>
    %30 = vector.broadcast %29 : vector<32x1xf32> to vector<32x64xf32>
    %31 = arith.mulf %26, %30 : vector<32x64xf32>
    %32 = arith.truncf %31 : vector<32x64xf32> to vector<32x64xbf16>
    %cst_14 = arith.constant dense<0.000000e+00> : vector<32x8xf32>
    %33 = tpu.matmul %32, %20, %cst_14 {dimension_numbers = #tpu.dot_dimension_numbers<[1], [0], [0], [1], [0, 0, 1, 1], [], []>} : vector<32x64xbf16>, vector<64x8xbf16>, vector<32x8xf32> -> vector<32x8xf32>
    %34 = vector.extract_strided_slice %15 {offsets = [0, 8], sizes = [32, 8], strides = [1, 1]} : vector<32x32xbf16> to vector<32x8xbf16>
    %35 = vector.extract_strided_slice %16 {offsets = [0, 8], sizes = [64, 8], strides = [1, 1]} : vector<64x32xbf16> to vector<64x8xbf16>
    %36 = vector.extract_strided_slice %17 {offsets = [0, 8], sizes = [64, 8], strides = [1, 1]} : vector<64x32xbf16> to vector<64x8xbf16>
    %cst_15 = arith.constant dense<0.000000e+00> : vector<32x64xf32>
    %37 = tpu.matmul %34, %35, %cst_15 {dimension_numbers = #tpu.dot_dimension_numbers<[1], [1], [0], [0], [0, 0, 1, 0], [], []>} : vector<32x8xbf16>, vector<64x8xbf16>, vector<32x64xf32> -> vector<32x64xf32>
    %cst_16 = arith.constant dense<0xFF800000> : vector<32xf32>
    %38 = vector.multi_reduction <maximumf>, %37, %cst_16 [1] : vector<32x64xf32> to vector<32xf32>
    %39 = vector.shape_cast %38 : vector<32xf32> to vector<32x1xf32>
    %40 = vector.broadcast %39 : vector<32x1xf32> to vector<32x64xf32>
    %41 = arith.subf %37, %40 : vector<32x64xf32>
    %42 = math.exp %41 : vector<32x64xf32>
    %cst_17 = arith.constant dense<0.000000e+00> : vector<32xf32>
    %43 = vector.multi_reduction <add>, %42, %cst_17 [1] : vector<32x64xf32> to vector<32xf32>
    %44 = vector.shape_cast %43 : vector<32xf32> to vector<32x1xf32>
    %45 = tpu.reciprocal %44 {approx = true} : vector<32x1xf32> -> vector<32x1xf32>
    %46 = vector.broadcast %45 : vector<32x1xf32> to vector<32x64xf32>
    %47 = arith.mulf %42, %46 : vector<32x64xf32>
    %48 = arith.truncf %47 : vector<32x64xf32> to vector<32x64xbf16>
    %cst_18 = arith.constant dense<0.000000e+00> : vector<32x8xf32>
    %49 = tpu.matmul %48, %36, %cst_18 {dimension_numbers = #tpu.dot_dimension_numbers<[1], [0], [0], [1], [0, 0, 1, 1], [], []>} : vector<32x64xbf16>, vector<64x8xbf16>, vector<32x8xf32> -> vector<32x8xf32>
    %50 = vector.extract_strided_slice %15 {offsets = [0, 16], sizes = [32, 8], strides = [1, 1]} : vector<32x32xbf16> to vector<32x8xbf16>
    %51 = vector.extract_strided_slice %16 {offsets = [0, 16], sizes = [64, 8], strides = [1, 1]} : vector<64x32xbf16> to vector<64x8xbf16>
    %52 = vector.extract_strided_slice %17 {offsets = [0, 16], sizes = [64, 8], strides = [1, 1]} : vector<64x32xbf16> to vector<64x8xbf16>
    %cst_19 = arith.constant dense<0.000000e+00> : vector<32x64xf32>
    %53 = tpu.matmul %50, %51, %cst_19 {dimension_numbers = #tpu.dot_dimension_numbers<[1], [1], [0], [0], [0, 0, 1, 0], [], []>} : vector<32x8xbf16>, vector<64x8xbf16>, vector<32x64xf32> -> vector<32x64xf32>
    %cst_20 = arith.constant dense<0xFF800000> : vector<32xf32>
    %54 = vector.multi_reduction <maximumf>, %53, %cst_20 [1] : vector<32x64xf32> to vector<32xf32>
    %55 = vector.shape_cast %54 : vector<32xf32> to vector<32x1xf32>
    %56 = vector.broadcast %55 : vector<32x1xf32> to vector<32x64xf32>
    %57 = arith.subf %53, %56 : vector<32x64xf32>
    %58 = math.exp %57 : vector<32x64xf32>
    %cst_21 = arith.constant dense<0.000000e+00> : vector<32xf32>
    %59 = vector.multi_reduction <add>, %58, %cst_21 [1] : vector<32x64xf32> to vector<32xf32>
    %60 = vector.shape_cast %59 : vector<32xf32> to vector<32x1xf32>
    %61 = tpu.reciprocal %60 {approx = true} : vector<32x1xf32> -> vector<32x1xf32>
    %62 = vector.broadcast %61 : vector<32x1xf32> to vector<32x64xf32>
    %63 = arith.mulf %58, %62 : vector<32x64xf32>
    %64 = arith.truncf %63 : vector<32x64xf32> to vector<32x64xbf16>
    %cst_22 = arith.constant dense<0.000000e+00> : vector<32x8xf32>
    %65 = tpu.matmul %64, %52, %cst_22 {dimension_numbers = #tpu.dot_dimension_numbers<[1], [0], [0], [1], [0, 0, 1, 1], [], []>} : vector<32x64xbf16>, vector<64x8xbf16>, vector<32x8xf32> -> vector<32x8xf32>
    %66 = vector.extract_strided_slice %15 {offsets = [0, 24], sizes = [32, 8], strides = [1, 1]} : vector<32x32xbf16> to vector<32x8xbf16>
    %67 = vector.extract_strided_slice %16 {offsets = [0, 24], sizes = [64, 8], strides = [1, 1]} : vector<64x32xbf16> to vector<64x8xbf16>
    %68 = vector.extract_strided_slice %17 {offsets = [0, 24], sizes = [64, 8], strides = [1, 1]} : vector<64x32xbf16> to vector<64x8xbf16>
    %cst_23 = arith.constant dense<0.000000e+00> : vector<32x64xf32>
    %69 = tpu.matmul %66, %67, %cst_23 {dimension_numbers = #tpu.dot_dimension_numbers<[1], [1], [0], [0], [0, 0, 1, 0], [], []>} : vector<32x8xbf16>, vector<64x8xbf16>, vector<32x64xf32> -> vector<32x64xf32>
    %cst_24 = arith.constant dense<0xFF800000> : vector<32xf32>
    %70 = vector.multi_reduction <maximumf>, %69, %cst_24 [1] : vector<32x64xf32> to vector<32xf32>
    %71 = vector.shape_cast %70 : vector<32xf32> to vector<32x1xf32>
    %72 = vector.broadcast %71 : vector<32x1xf32> to vector<32x64xf32>
    %73 = arith.subf %69, %72 : vector<32x64xf32>
    %74 = math.exp %73 : vector<32x64xf32>
    %cst_25 = arith.constant dense<0.000000e+00> : vector<32xf32>
    %75 = vector.multi_reduction <add>, %74, %cst_25 [1] : vector<32x64xf32> to vector<32xf32>
    %76 = vector.shape_cast %75 : vector<32xf32> to vector<32x1xf32>
    %77 = tpu.reciprocal %76 {approx = true} : vector<32x1xf32> -> vector<32x1xf32>
    %78 = vector.broadcast %77 : vector<32x1xf32> to vector<32x64xf32>
    %79 = arith.mulf %74, %78 : vector<32x64xf32>
    %80 = arith.truncf %79 : vector<32x64xf32> to vector<32x64xbf16>
    %cst_26 = arith.constant dense<0.000000e+00> : vector<32x8xf32>
    %81 = tpu.matmul %80, %68, %cst_26 {dimension_numbers = #tpu.dot_dimension_numbers<[1], [0], [0], [1], [0, 0, 1, 1], [], []>} : vector<32x64xbf16>, vector<64x8xbf16>, vector<32x8xf32> -> vector<32x8xf32>
    %82 = tpu.concatenate %33, %49, %65, %81 in 1 : vector<32x8xf32>, vector<32x8xf32>, vector<32x8xf32>, vector<32x8xf32> -> vector<32x32xf32>
    %83 = arith.truncf %82 : vector<32x32xf32> to vector<32x32xbf16>
    %c0_27 = arith.constant 0 : index
    %c0_28 = arith.constant 0 : index
    %84 = vector.load %arg11[%c0_27, %c0_28] : memref<32x32xbf16, #tpu.memory_space<vmem>>, vector<32x32xbf16>
    %cst_29 = arith.constant dense<0.000000e+00> : vector<32x32xf32>
    %85 = tpu.matmul %83, %84, %cst_29 {dimension_numbers = #tpu.dot_dimension_numbers<[1], [0], [0], [1], [0, 0, 1, 1], [], []>} : vector<32x32xbf16>, vector<32x32xbf16>, vector<32x32xf32> -> vector<32x32xf32>
    %c0_30 = arith.constant 0 : index
    %c0_31 = arith.constant 0 : index
    %86 = vector.load %arg12[%c0_30, %c0_31] : memref<1x32xf32, #tpu.memory_space<vmem>>, vector<1x32xf32>
    %87 = vector.broadcast %86 : vector<1x32xf32> to vector<32x32xf32>
    %88 = arith.addf %85, %87 : vector<32x32xf32>
    %89 = arith.addf %7, %88 : vector<32x32xf32>
    %c0_32 = arith.constant 0 : index
    %c0_33 = arith.constant 0 : index
    %90 = vector.load %arg13[%c0_32, %c0_33] : memref<1x32xf32, #tpu.memory_space<vmem>>, vector<1x32xf32>
    %c0_34 = arith.constant 0 : index
    %c0_35 = arith.constant 0 : index
    %91 = vector.load %arg14[%c0_34, %c0_35] : memref<1x32xf32, #tpu.memory_space<vmem>>, vector<1x32xf32>
    %cst_36 = arith.constant dense<0.000000e+00> : vector<32xf32>
    %92 = vector.multi_reduction <add>, %89, %cst_36 [1] : vector<32x32xf32> to vector<32xf32>
    %93 = vector.shape_cast %92 : vector<32xf32> to vector<32x1xf32>
    %cst_37 = arith.constant 3.200000e+01 : f32
    %94 = vector.broadcast %cst_37 : f32 to vector<32x1xf32>
    %95 = arith.divf %93, %94 : vector<32x1xf32>
    %96 = vector.broadcast %95 : vector<32x1xf32> to vector<32x32xf32>
    %97 = arith.subf %89, %96 : vector<32x32xf32>
    %98 = arith.mulf %97, %97 : vector<32x32xf32>
    %cst_38 = arith.constant dense<0.000000e+00> : vector<32xf32>
    %99 = vector.multi_reduction <add>, %98, %cst_38 [1] : vector<32x32xf32> to vector<32xf32>
    %100 = vector.shape_cast %99 : vector<32xf32> to vector<32x1xf32>
    %cst_39 = arith.constant 3.200000e+01 : f32
    %101 = vector.broadcast %cst_39 : f32 to vector<32x1xf32>
    %102 = arith.divf %100, %101 : vector<32x1xf32>
    %103 = vector.broadcast %95 : vector<32x1xf32> to vector<32x32xf32>
    %104 = arith.subf %89, %103 : vector<32x32xf32>
    %cst_40 = arith.constant 9.99999974E-6 : f32
    %105 = vector.broadcast %cst_40 : f32 to vector<32x1xf32>
    %106 = arith.addf %102, %105 : vector<32x1xf32>
    %107 = math.rsqrt %106 : vector<32x1xf32>
    %108 = vector.broadcast %107 : vector<32x1xf32> to vector<32x32xf32>
    %109 = arith.mulf %104, %108 : vector<32x32xf32>
    %110 = vector.broadcast %90 : vector<1x32xf32> to vector<32x32xf32>
    %111 = arith.mulf %109, %110 : vector<32x32xf32>
    %112 = vector.broadcast %91 : vector<1x32xf32> to vector<32x32xf32>
    %113 = arith.addf %111, %112 : vector<32x32xf32>
    %114 = arith.truncf %113 : vector<32x32xf32> to vector<32x32xbf16>
    %c0_41 = arith.constant 0 : index
    %c0_42 = arith.constant 0 : index
    %115 = vector.load %arg15[%c0_41, %c0_42] : memref<32x128xbf16, #tpu.memory_space<vmem>>, vector<32x128xbf16>
    %cst_43 = arith.constant dense<0.000000e+00> : vector<32x128xf32>
    %116 = tpu.matmul %114, %115, %cst_43 {dimension_numbers = #tpu.dot_dimension_numbers<[1], [0], [0], [1], [0, 0, 1, 1], [], []>} : vector<32x32xbf16>, vector<32x128xbf16>, vector<32x128xf32> -> vector<32x128xf32>
    %c0_44 = arith.constant 0 : index
    %c0_45 = arith.constant 0 : index
    %117 = vector.load %arg16[%c0_44, %c0_45] : memref<1x128xf32, #tpu.memory_space<vmem>>, vector<1x128xf32>
    %118 = vector.broadcast %117 : vector<1x128xf32> to vector<32x128xf32>
    %119 = arith.addf %116, %118 : vector<32x128xf32>
    %120 = arith.mulf %119, %119 : vector<32x128xf32>
    %121 = arith.mulf %119, %120 : vector<32x128xf32>
    %cst_46 = arith.constant 4.471500e-02 : f32
    %122 = vector.broadcast %cst_46 : f32 to vector<32x128xf32>
    %123 = arith.mulf %122, %121 : vector<32x128xf32>
    %124 = arith.addf %119, %123 : vector<32x128xf32>
    %cst_47 = arith.constant 0.797884583 : f32
    %125 = vector.broadcast %cst_47 : f32 to vector<32x128xf32>
    %126 = arith.mulf %125, %124 : vector<32x128xf32>
    %127 = math.tanh %126 : vector<32x128xf32>
    %cst_48 = arith.constant 1.000000e+00 : f32
    %128 = vector.broadcast %cst_48 : f32 to vector<32x128xf32>
    %129 = arith.addf %128, %127 : vector<32x128xf32>
    %cst_49 = arith.constant 5.000000e-01 : f32
    %130 = vector.broadcast %cst_49 : f32 to vector<32x128xf32>
    %131 = arith.mulf %130, %129 : vector<32x128xf32>
    %132 = arith.mulf %119, %131 : vector<32x128xf32>
    %133 = arith.truncf %132 : vector<32x128xf32> to vector<32x128xbf16>
    %c0_50 = arith.constant 0 : index
    %c0_51 = arith.constant 0 : index
    %134 = vector.load %arg17[%c0_50, %c0_51] : memref<128x32xbf16, #tpu.memory_space<vmem>>, vector<128x32xbf16>
    %cst_52 = arith.constant dense<0.000000e+00> : vector<32x32xf32>
    %135 = tpu.matmul %133, %134, %cst_52 {dimension_numbers = #tpu.dot_dimension_numbers<[1], [0], [0], [1], [0, 0, 1, 1], [], []>} : vector<32x128xbf16>, vector<128x32xbf16>, vector<32x32xf32> -> vector<32x32xf32>
    %c0_53 = arith.constant 0 : index
    %c0_54 = arith.constant 0 : index
    %136 = vector.load %arg18[%c0_53, %c0_54] : memref<1x32xf32, #tpu.memory_space<vmem>>, vector<1x32xf32>
    %137 = vector.broadcast %136 : vector<1x32xf32> to vector<32x32xf32>
    %138 = arith.addf %135, %137 : vector<32x32xf32>
    %139 = arith.addf %89, %138 : vector<32x32xf32>
    %c0_55 = arith.constant 0 : index
    %c0_56 = arith.constant 0 : index
    %c0_57 = arith.constant 0 : index
    %140 = vector.load %arg19[%c0_55, %c0_56, %c0_57] : memref<1x32x32xf32, #tpu.memory_space<vmem>>, vector<1x32x32xf32>
    %141 = vector.shape_cast %140 : vector<1x32x32xf32> to vector<32x32xf32>
    %142 = vector.shape_cast %139 : vector<32x32xf32> to vector<1x32x32xf32>
    tpu.vector_store %arg19[%c0_55, %c0_56, %c0_57], %142 {strides = array<i32>} : memref<1x32x32xf32, #tpu.memory_space<vmem>>, vector<1x32x32xf32>,
    return
  }
  func.func @transform_0(%arg0: i32, %arg1: i32) -> (i32, i32, i32) {
    %c0_i32 = arith.constant 0 : i32
    %c0_i32_0 = arith.constant 0 : i32
    %c0_i32_1 = arith.constant 0 : i32
    return %arg0, %c0_i32, %c0_i32_0 : i32, i32, i32
  }
  func.func @transform_1(%arg0: i32, %arg1: i32) -> (i32, i32) {
    %c0_i32 = arith.constant 0 : i32
    %c0_i32_0 = arith.constant 0 : i32
    %c0_i32_1 = arith.constant 0 : i32
    return %c0_i32, %c0_i32_0 : i32, i32
  }
  func.func @transform_2(%arg0: i32, %arg1: i32) -> (i32, i32) {
    %c0_i32 = arith.constant 0 : i32
    %c0_i32_0 = arith.constant 0 : i32
    %c0_i32_1 = arith.constant 0 : i32
    return %c0_i32, %c0_i32_0 : i32, i32
  }
  func.func @transform_3(%arg0: i32, %arg1: i32) -> (i32, i32) {
    %c0_i32 = arith.constant 0 : i32
    %c0_i32_0 = arith.constant 0 : i32
    %c0_i32_1 = arith.constant 0 : i32
    return %c0_i32, %c0_i32_0 : i32, i32
  }
  func.func @transform_4(%arg0: i32, %arg1: i32) -> (i32, i32) {
    %c0_i32 = arith.constant 0 : i32
    %c0_i32_0 = arith.constant 0 : i32
    %c0_i32_1 = arith.constant 0 : i32
    return %c0_i32, %c0_i32_0 : i32, i32
  }
  func.func @transform_5(%arg0: i32, %arg1: i32) -> (i32, i32) {
    %c0_i32 = arith.constant 0 : i32
    %c0_i32_0 = arith.constant 0 : i32
    %c0_i32_1 = arith.constant 0 : i32
    return %c0_i32, %c0_i32_0 : i32, i32
  }
  func.func @transform_6(%arg0: i32, %arg1: i32) -> (i32, i32) {
    %c0_i32 = arith.constant 0 : i32
    %c0_i32_0 = arith.constant 0 : i32
    %c0_i32_1 = arith.constant 0 : i32
    return %c0_i32, %c0_i32_0 : i32, i32
  }
  func.func @transform_7(%arg0: i32, %arg1: i32) -> (i32, i32) {
    %c0_i32 = arith.constant 0 : i32
    %c0_i32_0 = arith.constant 0 : i32
    %c0_i32_1 = arith.constant 0 : i32
    return %c0_i32, %c0_i32_0 : i32, i32
  }
  func.func @transform_8(%arg0: i32, %arg1: i32) -> (i32, i32) {
    %c0_i32 = arith.constant 0 : i32
    %c0_i32_0 = arith.constant 0 : i32
    %c0_i32_1 = arith.constant 0 : i32
    return %c0_i32, %c0_i32_0 : i32, i32
  }
  func.func @transform_9(%arg0: i32, %arg1: i32) -> (i32, i32) {
    %c0_i32 = arith.constant 0 : i32
    %c0_i32_0 = arith.constant 0 : i32
    %c0_i32_1 = arith.constant 0 : i32
    return %c0_i32, %c0_i32_0 : i32, i32
  }
  func.func @transform_10(%arg0: i32, %arg1: i32) -> (i32, i32) {
    %c0_i32 = arith.constant 0 : i32
    %c0_i32_0 = arith.constant 0 : i32
    %c0_i32_1 = arith.constant 0 : i32
    return %c0_i32, %c0_i32_0 : i32, i32
  }
  func.func @transform_11(%arg0: i32, %arg1: i32) -> (i32, i32) {
    %c0_i32 = arith.constant 0 : i32
    %c0_i32_0 = arith.constant 0 : i32
    %c0_i32_1 = arith.constant 0 : i32
    return %c0_i32, %c0_i32_0 : i32, i32
  }
  func.func @transform_12(%arg0: i32, %arg1: i32) -> (i32, i32) {
    %c0_i32 = arith.constant 0 : i32
    %c0_i32_0 = arith.constant 0 : i32
    %c0_i32_1 = arith.constant 0 : i32
    return %c0_i32, %c0_i32_0 : i32, i32
  }
  func.func @transform_13(%arg0: i32, %arg1: i32) -> (i32, i32) {
    %c0_i32 = arith.constant 0 : i32
    %c0_i32_0 = arith.constant 0 : i32
    %c0_i32_1 = arith.constant 0 : i32
    return %c0_i32, %c0_i32_0 : i32, i32
  }
  func.func @transform_14(%arg0: i32, %arg1: i32) -> (i32, i32) {
    %c0_i32 = arith.constant 0 : i32
    %c0_i32_0 = arith.constant 0 : i32
    %c0_i32_1 = arith.constant 0 : i32
    return %c0_i32, %c0_i32_0 : i32, i32
  }
  func.func @transform_15(%arg0: i32, %arg1: i32) -> (i32, i32) {
    %c0_i32 = arith.constant 0 : i32
    %c0_i32_0 = arith.constant 0 : i32
    %c0_i32_1 = arith.constant 0 : i32
    return %c0_i32, %c0_i32_0 : i32, i32
  }
  func.func @transform_16(%arg0: i32, %arg1: i32) -> (i32, i32) {
    %c0_i32 = arith.constant 0 : i32
    %c0_i32_0 = arith.constant 0 : i32
    %c0_i32_1 = arith.constant 0 : i32
    return %c0_i32, %c0_i32_0 : i32, i32
  }
  func.func @transform_17(%arg0: i32, %arg1: i32) -> (i32, i32, i32) {
    %c0_i32 = arith.constant 0 : i32
    %c0_i32_0 = arith.constant 0 : i32
    return %arg0, %arg1, %c0_i32 : i32, i32, i32
  }
}

</mosaic_0001>

<bundles_post_ra>
// kernel: tpu_custom_call.1
= control target key start
LH: loop header
LB: loop body
LE: loop exit
PB: predicated region body
PF: predicated region fallthrough
CT: control target
= control target key end

     0   :  { %s2634_s24 = smov 0   ;;  %s2636_s25 = smov 0   ;;  %s3259_s0 = inlined_call_operand.vmem [shape: f32[2,64,32], index: 0, kind: input, shape index: {}]   ;;  %s3260_s1 = inlined_call_operand.vmem [shape: f32[1,32], index: 1, kind: input, shape index: {}]   ;;  %s3261_s2 = inlined_call_operand.vmem [shape: f32[1,32], index: 2, kind: input, shape index: {}]   ;;  %s3262_s3 = inlined_call_operand.vmem [shape: bf16[32,32], index: 3, kind: input, shape index: {}]   ;;  %s3263_s4 = inlined_call_operand.vmem [shape: f32[1,32], index: 4, kind: input, shape index: {}]   ;;  %s3264_s5 = inlined_call_operand.vmem [shape: bf16[32,32], index: 5, kind: input, shape index: {}]   ;;  %s3265_s6 = inlined_call_operand.vmem [shape: f32[1,32], index: 6, kind: input, shape index: {}]   ;;  %s3266_s7 = inlined_call_operand.vmem [shape: bf16[32,32], index: 7, kind: input, shape index: {}]   ;;  %s3267_s8 = inlined_call_operand.vmem [shape: f32[1,32], index: 8, kind: input, shape index: {}]   ;;  %s3268_s9 = inlined_call_operand.vmem [shape: bf16[32,32], index: 9, kind: input, shape index: {}]   ;;  %s3269_s10 = inlined_call_operand.vmem [shape: f32[1,32], index: 10, kind: input, shape index: {}]   ;;  %s3270_s11 = inlined_call_operand.vmem [shape: f32[1,32], index: 11, kind: input, shape index: {}]   ;;  %s3271_s12 = inlined_call_operand.vmem [shape: f32[1,32], index: 12, kind: input, shape index: {}]   ;;  %s3272_s13 = inlined_call_operand.vmem [shape: bf16[32,128], index: 13, kind: input, shape index: {}]   ;;  %s3273_s14 = inlined_call_operand.vmem [shape: f32[1,128], index: 14, kind: input, shape index: {}]   ;;  %s3274_s15 = inlined_call_operand.vmem [shape: bf16[128,32], index: 15, kind: input, shape index: {}]   ;;  %s3275_s16 = inlined_call_operand.vmem [shape: f32[1,32], index: 16, kind: input, shape index: {}]   ;;  %s3276_s17 = inlined_call_operand.vmem [shape: f32[2,64,32], index: 17, kind: output, shape index: {}]  }
   0x1   :  { %3279 = sst [smem:[#allocation9_spill]] %s3259_s0  ;;  %s2638_s26 = smov 0  }
   0x2   :  { %3280 = sst [smem:[#allocation10_spill]] %s3260_s1  ;;  %s2640_s27 = smov 0  }
   0x3   :  { %s2642_s28 = smov 0  }
   0x4 LB: > { %3281 = sst [smem:[#allocation5_spill]] %s2526_s26  ;;  %s36_s29 = sadd.s32 1, %s2526_s26  ;;  %s2534_s28 = sphi %s2642_s28, %s27_s28   ;;  %s2530_s27 = sphi %s2640_s27, %s3294_s27   ;;  %s2526_s26 = sphi %s2638_s26, %s3293_s26   ;;  %s2522_s25 = sphi %s2636_s25, %s3292_s25   ;;  %s2518_s24 = sphi %s2634_s24, %s3291_s24  }
   0x5   : > { %3282 = sst [smem:[#allocation6_spill]] %s2530_s27  ;;  %s39_s0 = sadd.s32 1, %s2530_s27 }
   0x6   : > { %p37_p0 = scmp.ge.s32.totalorder %s36_s29, 2  ;;  %p2118_p1 = scmp.ge.s32.totalorder %s2534_s28, 1 }
   0x7   : > { %p501_p2 = scmp.lt.s32.totalorder %s2534_s28, 5 }
   0x8   : > { %s3296_s29 = smov (%p37_p0, %s36_s29), 0  ;;  %s3298_s0 = smov (!%p37_p0, %s39_s0), %s2530_s27 }
   0x9   : > { %3283 = sst [smem:[#allocation7_spill]] %s3296_s29  ;;  %p502_p3 = pnand %p2118_p1, %p501_p2 }
   0xa   : > { %p41_p4 = scmp.ge.s32.totalorder %s3298_s0, 2  ;;  %p557_p5 = scmp.lt.s32.totalorder (!%p502_p3), %s2522_s25, 1 }
   0xb   : > { %505 = sbr.rel (%p502_p3) target bundleno = 2533 (0x9e5), region = 88  ;;  %s2121_s30 = sshll.u32 (!%p502_p3), %s2518_s24, 2 }
   0xc   : > { %s3300_s0 = smov (%p41_p4, %s3298_s0), 0  ;;  %p565_p6 = scmp.lt.s32.totalorder (!%p502_p3), %s2121_s30, 7 }
   0xd   : > { %3284 = sst [smem:[#allocation8_spill]] %s3300_s0  ;;  %p2124_p7 = scmp.ne.s32.totalorder (!%p502_p3), %s2518_s24, 0 }
   0xe   : > { %s3285_s21 = sld [smem:[#allocation9_spill]] (!%p502_p3) }
  0x10   : > { %s3302_s25 = smov (!%p557_p5, %s2522_s25), 1  ;;  %s3304_s30 = smov (!%p565_p6, %s2121_s30), 7 }
  0x11   : > { %s2271_s18 = sshll.u32 %s3302_s25, 6  ;;  %s2122_s19 = sshll.u32 %s3302_s25, 3 }
  0x12   : > { %s568_s23 = sadd.s32 %s2122_s19, %s3304_s30  ;;  %576 = sbr.rel (%p2124_p7) target bundleno = 468 (0x1d4), region = 92 }
  0x13   : > { %s2123_s29 = sshll.u32 %s568_s23, 3  ;;  %s3286_s23 = sld [smem:[#allocation10_spill]] (!%p2124_p7) }
  0x14   : > { %s2670_s22 = scalar_lea.vmem %s3285_s21, %s2271_s18  ;;  %s2675_s0 = scalar_lea.vmem %s3276_s17, %s2123_s29 }
  0x17   : > { %v583_v0 = vld [vmem:[%s2670_s22 + $0x30] sm:$0xff]  ;;  %vm587_vm0 = vcmask 261120   ;;  %v581_v1 = vld [vmem:[%s2670_s22 + $0x20] sm:$0xff]  ;;  %v584_v6 = vld [vmem:[%s2670_s22 + $0x38] sm:$0xff]  ;;  %v2536_v16 = vmov 32.0  }
  0x18   : > { %v577_v2 = vld [vmem:[%s2670_s22] sm:$0xff]  ;;  %v606_v3 = vsel %vm587_vm0, %v583_v0, 0.0  ;;  %v600_v4 = vsel %vm587_vm0, %v581_v1, 0.0  ;;  %v582_v7 = vld [vmem:[%s2670_s22 + $0x28] sm:$0xff]  ;;  %v609_v9 = vsel %vm587_vm0, %v584_v6, 0.0  ;;  %v579_v12 = vld [vmem:[%s2670_s22 + $0x10] sm:$0xff]  ;;  %2360 = vrcp.f32 %v2536_v16 }
  0x19   : > { %v588_v5 = vsel %vm587_vm0, %v577_v2, 0.0  ;;  %607 = vadd.xlane.f32.xlu2 %v606_v3  ;;  %601 = vadd.xlane.f32.xlu0 %v600_v4  ;;  %v578_v8 = vld [vmem:[%s2670_s22 + $0x8] sm:$0xff]  ;;  %v603_v10 = vsel %vm587_vm0, %v582_v7, 0.0  ;;  %v580_v13 = vld [vmem:[%s2670_s22 + $0x18] sm:$0xff]  ;;  %v594_v14 = vsel %vm587_vm0, %v579_v12, 0.0 }
  0x1a   : > { %589 = vadd.xlane.f32.xlu1 %v588_v5  ;;  %v591_v11 = vsel %vm587_vm0, %v578_v8, 0.0  ;;  %v597_v15 = vsel %vm587_vm0, %v580_v13, 0.0  ;;  %v2273_v5 = vld [vmem:[%s3264_s5 + $0x8] sm:$0xff] }
  0x1b   : > { %868 = vmatpush.bf16.msra.mxu0 %v2273_v5  ;;  %2300 = vmatpush.bf16.msra.mxu2 %v2273_v5 }
  0x1e   : > { %v2361_v17 = vpop.eup %2360 }
  0x1f   : > { %v613_v18 = vmul.f32 32.0, %v2361_v17  ;;  %vm617_vm1 = vweird.f32 %v2361_v17 }
  0x21   : > { %610 = vadd.xlane.f32.xlu2 %v609_v9  ;;  %604 = vadd.xlane.f32.xlu0 %v603_v10  ;;  %v614_v19 = vsub.f32 1.0, %v613_v18 }
  0x22   : > { %592 = vadd.xlane.f32.xlu1 %v591_v11  ;;  %v2272_v11 = vld [vmem:[%s3264_s5] sm:$0xff] }
  0x23   : > { %v615_v20 = vmul.f32 %v2361_v17, %v614_v19  ;;  %869 = vmatpush.bf16.msra.mxu0 %v2272_v11  ;;  %2301 = vmatpush.bf16.msra.mxu2 %v2272_v11 }
  0x25   : > { %v616_v21 = vadd.f32 %v2361_v17, %v615_v20 }
  0x27   : > { %v2694_v22 = vsel %vm617_vm1, %v2361_v17, %v616_v21  ;;  %vm801_vm1 = vcmask 257024  }
  0x29   : > { %595 = vadd.xlane.f32.xlu0 %v594_v14 }
  0x2a   : > { %598 = vadd.xlane.f32.xlu1 %v597_v15 }
  0x8c   : > { %v608_v23 = vpop.xlane.xlu2 %607  ;;  %v602_v24 = vpop.xlane.xlu0 %601 }
  0x8d   : > { %v623_v25 = vmul.f32 %v2694_v22, %v602_v24  ;;  %v590_v26 = vpop.xlane.xlu1 %589  ;;  %v625_v36 = vmul.f32 %v2694_v22, %v608_v23 }
  0x8e   : > { %v619_v27 = vmul.f32 %v2694_v22, %v590_v26 }
  0x8f   : > { %v2698_v28 = vsub.f32 %v581_v1, %v623_v25  ;;  %v2718_v44 = vsub.f32 %v583_v0, %v625_v36 }
  0x90   : > { %v2700_v29 = vsub.f32 %v577_v2, %v619_v27 }
  0x91   : > { %v639_v30 = vmul.f32 %v2698_v28, %v2698_v28  ;;  %v641_v53 = vmul.f32 %v2718_v44, %v2718_v44 }
  0x92   : > { %v635_v31 = vmul.f32 %v2700_v29, %v2700_v29 }
  0x93   : > { %v655_v32 = vsel %vm587_vm0, %v639_v30, 0.0  ;;  %v661_v57 = vsel %vm587_vm0, %v641_v53, 0.0 }
  0x94   : > { %v611_v33 = vpop.xlane.xlu2 %610  ;;  %656 = vadd.xlane.f32.xlu2 %v655_v32  ;;  %v605_v34 = vpop.xlane.xlu0 %604  ;;  %v643_v35 = vsel %vm587_vm0, %v635_v31, 0.0 }
  0x95   : > { %v626_v37 = vmul.f32 %v2694_v22, %v611_v33  ;;  %v624_v38 = vmul.f32 %v2694_v22, %v605_v34  ;;  %644 = vadd.xlane.f32.xlu1 %v643_v35  ;;  %v593_v39 = vpop.xlane.xlu1 %592 }
  0x96   : > { %v620_v40 = vmul.f32 %v2694_v22, %v593_v39 }
  0x97   : > { %v2712_v41 = vsub.f32 %v584_v6, %v626_v37  ;;  %v2714_v42 = vsub.f32 %v582_v7, %v624_v38  ;;  %v2275_v6 = vld [vmem:[%s3266_s7 + $0x8] sm:$0xff] }
  0x98   : > { %v2716_v43 = vsub.f32 %v578_v8, %v620_v40  ;;  %933 = vmatpush.bf16.msra.mxu1 %v2275_v6  ;;  %2302 = vmatpush.bf16.msra.mxu3 %v2275_v6 }
  0x99   : > { %v640_v45 = vmul.f32 %v2714_v42, %v2714_v42  ;;  %v642_v46 = vmul.f32 %v2712_v41, %v2712_v41 }
  0x9a   : > { %v636_v47 = vmul.f32 %v2716_v43, %v2716_v43 }
  0x9b   : > { %v658_v48 = vsel %vm587_vm0, %v640_v45, 0.0  ;;  %v664_v49 = vsel %vm587_vm0, %v642_v46, 0.0 }
  0x9c   : > { %659 = vadd.xlane.f32.xlu0 %v658_v48  ;;  %v596_v50 = vpop.xlane.xlu0 %595  ;;  %v646_v51 = vsel %vm587_vm0, %v636_v47, 0.0  ;;  %v2783_v48 = vld [vmem:[%s3286_s23] ss:$0 sm:$0xff] }
  0x9d   : > { %v621_v52 = vmul.f32 %v2694_v22, %v596_v50  ;;  %665 = vadd.xlane.f32.xlu1 %v664_v49  ;;  %647 = vadd.xlane.f32.xlu2 %v646_v51  ;;  %v599_v54 = vpop.xlane.xlu1 %598 }
  0x9e   : > { %v622_v55 = vmul.f32 %v2694_v22, %v599_v54 }
  0x9f   : > { %v2733_v56 = vsub.f32 %v579_v12, %v621_v52  ;;  %v2274_v12 = vld [vmem:[%s3266_s7] sm:$0xff] }
  0xa0   : > { %v2738_v59 = vsub.f32 %v580_v13, %v622_v55  ;;  %934 = vmatpush.bf16.msra.mxu1 %v2274_v12  ;;  %2303 = vmatpush.bf16.msra.mxu3 %v2274_v12  ;;  %v2794_v55 = vld [vmem:[%s3261_s2] ss:$0 sm:$0xff] }
  0xa1   : > { %v637_v58 = vmul.f32 %v2733_v56, %v2733_v56 }
  0xa2   : > { %v638_v61 = vmul.f32 %v2738_v59, %v2738_v59 }
  0xa3   : > { %v649_v60 = vsel %vm587_vm0, %v637_v58, 0.0 }
  0xa4   : > { %662 = vadd.xlane.f32.xlu0 %v661_v57  ;;  %v652_v62 = vsel %vm587_vm0, %v638_v61, 0.0 }
  0xa5   : > { %650 = vadd.xlane.f32.xlu2 %v649_v60 }
  0xac   : > { %653 = vadd.xlane.f32.xlu0 %v652_v62 }
 0x107   : > { %v657_v63 = vpop.xlane.xlu2 %656 }
 0x108   : > { %v671_v0 = vmul.f32 %v657_v63, %v2694_v22  ;;  %v645_v1 = vpop.xlane.xlu1 %644 }
 0x109   : > { %v667_v2 = vmul.f32 %v645_v1, %v2694_v22 }
 0x10a   : > { %v679_v3 = vadd.f32 1e-05, %v671_v0 }
 0x10b   : > { %v675_v4 = vadd.f32 1e-05, %v667_v2 }
 0x10c   : > { %2362 = vrsqrt.f32 %v679_v3  ;;  %vm729_vm5 = vweird.f32 %v679_v3 }
 0x10d   : > { %2364 = vrsqrt.f32 %v675_v4  ;;  %vm689_vm3 = vweird.f32 %v675_v4 }
 0x10f   : > { %v660_v7 = vpop.xlane.xlu0 %659 }
 0x110   : > { %v672_v8 = vmul.f32 %v660_v7, %v2694_v22  ;;  %v648_v9 = vpop.xlane.xlu2 %647  ;;  %v666_v10 = vpop.xlane.xlu1 %665 }
 0x111   : > { %v668_v13 = vmul.f32 %v648_v9, %v2694_v22  ;;  %v674_v14 = vmul.f32 %v666_v10, %v2694_v22 }
 0x112   : > { %v2363_v15 = vpop.eup %2362  ;;  %v2761_v16 = vadd.f32 1e-05, %v672_v8 }
 0x113   : > { %v2365_v17 = vpop.eup %2364  ;;  %v724_v18 = vmul.f32 %v2363_v15, %v679_v3  ;;  %v2763_v19 = vadd.f32 1e-05, %v668_v13  ;;  %v2765_v20 = vadd.f32 1e-05, %v674_v14  ;;  %vm730_vm2 = vweird.f32 %v2363_v15 }
 0x114   : > { %v684_v21 = vmul.f32 %v2365_v17, %v675_v4  ;;  %2366 = vrsqrt.f32 %v2761_v16  ;;  %vm690_vm4 = vweird.f32 %v2365_v17  ;;  %vm731_vm6 = vmor %vm729_vm5, %vm730_vm2  ;;  %vm739_vm7 = vweird.f32 %v2761_v16 }
 0x115   : > { %v725_v23 = vmul.f32 %v2363_v15, %v724_v18  ;;  %2368 = vrsqrt.f32 %v2763_v19  ;;  %vm691_vm8 = vmor %vm689_vm3, %vm690_vm4  ;;  %vm699_vm9 = vweird.f32 %v2763_v19  ;;  %vm759_vm10 = vweird.f32 %v2765_v20 }
 0x116   : > { %v685_v24 = vmul.f32 %v2365_v17, %v684_v21  ;;  %2370 = vrsqrt.f32 %v2765_v20 }
 0x117   : > { %v726_v25 = vmul.f32 0.5, %v725_v23  ;;  %v663_v26 = vpop.xlane.xlu0 %662 }
 0x118   : > { %v686_v27 = vmul.f32 0.5, %v685_v24  ;;  %v673_v30 = vmul.f32 %v663_v26, %v2694_v22  ;;  %v651_v31 = vpop.xlane.xlu2 %650 }
 0x119   : > { %v727_v32 = vsub.f32 1.5, %v726_v25  ;;  %v669_v33 = vmul.f32 %v651_v31, %v2694_v22 }
 0x11a   : > { %v2367_v34 = vpop.eup %2366  ;;  %v687_v35 = vsub.f32 1.5, %v686_v27  ;;  %v2772_v36 = vadd.f32 1e-05, %v673_v30 }
 0x11b   : > { %v2369_v37 = vpop.eup %2368  ;;  %v728_v38 = vmul.f32 %v2363_v15, %v727_v32  ;;  %v734_v39 = vmul.f32 %v2367_v34, %v2761_v16  ;;  %v2775_v40 = vadd.f32 1e-05, %v669_v33  ;;  %vm740_vm11 = vweird.f32 %v2367_v34 }
 0x11c   : > { %v2371_v45 = vpop.eup %2370  ;;  %v688_v46 = vmul.f32 %v2365_v17, %v687_v35  ;;  %v694_v47 = vmul.f32 %v2369_v37, %v2763_v19  ;;  %2372 = vrsqrt.f32 %v2772_v36  ;;  %vm700_vm13 = vweird.f32 %v2369_v37  ;;  %vm741_vm14 = vmor %vm739_vm7, %vm740_vm11 }
 0x11d   : > { %v732_v49 = vsel %vm731_vm6, %v2363_v15, %v728_v38  ;;  %v735_v50 = vmul.f32 %v2367_v34, %v734_v39  ;;  %v754_v51 = vmul.f32 %v2371_v45, %v2765_v20  ;;  %2374 = vrsqrt.f32 %v2775_v40  ;;  %vm701_vm2 = vmor %vm699_vm9, %vm700_vm13 }
 0x11e   : > { %v767_v52 = vmul.f32 %v732_v49, %v2698_v28  ;;  %v692_v53 = vsel %vm691_vm8, %v2365_v17, %v688_v46  ;;  %v695_v54 = vmul.f32 %v2369_v37, %v694_v47  ;;  %vm760_vm12 = vweird.f32 %v2371_v45 }
 0x11f   : > { %v763_v57 = vmul.f32 %v692_v53, %v2700_v29  ;;  %v736_v58 = vmul.f32 0.5, %v735_v50  ;;  %v755_v60 = vmul.f32 %v2371_v45, %v754_v51  ;;  %v654_v61 = vpop.xlane.xlu0 %653  ;;  %vm2809_vm15 = vmor %vm759_vm10, %vm760_vm12  ;;  %vm709_vm4 = vweird.f32 %v2775_v40 }
 0x120   : > { %v696_v62 = vmul.f32 0.5, %v695_v54  ;;  %v670_v28 = vmul.f32 %v654_v61, %v2694_v22  ;;  %v778_v63 = vmul.f32 %v2783_v48, %v767_v52  ;;  %vm749_vm6 = vweird.f32 %v2772_v36 }
 0x121   : > { %v737_v0 = vsub.f32 1.5, %v736_v58  ;;  %v756_v1 = vmul.f32 0.5, %v755_v60  ;;  %v774_v2 = vmul.f32 %v2783_v48, %v763_v57 }
 0x122   : > { %v2373_v3 = vpop.eup %2372  ;;  %v697_v4 = vsub.f32 1.5, %v696_v62  ;;  %v2801_v29 = vadd.f32 1e-05, %v670_v28  ;;  %v789_v5 = vadd.f32 %v2794_v55, %v778_v63 }
 0x123   : > { %v738_v6 = vmul.f32 %v2367_v34, %v737_v0  ;;  %v757_v7 = vsub.f32 1.5, %v756_v1  ;;  %v744_v22 = vmul.f32 %v2373_v3, %v2772_v36  ;;  %v785_v10 = vadd.f32 %v2794_v55, %v774_v2  ;;  %v2375_v11 = vpop.eup %2374 }
 0x124   : > { %v698_v8 = vmul.f32 %v2369_v37, %v697_v4  ;;  %2376 = vrsqrt.f32 %v2801_v29  ;;  %v797_v15 = vpack.c.bf16 %v789_v5, %v789_v5  ;;  %v704_v18 = vmul.f32 %v2375_v11, %v2775_v40 }
 0x125   : > { %v742_v12 = vsel %vm741_vm14, %v2367_v34, %v738_v6  ;;  %v758_v13 = vmul.f32 %v2371_v45, %v757_v7  ;;  %v745_v14 = vmul.f32 %v2373_v3, %v744_v22  ;;  %v793_v24 = vpack.c.bf16 %v785_v10, %v785_v10 }
 0x126   : > { %v768_v16 = vmul.f32 %v742_v12, %v2714_v42  ;;  %v702_v17 = vsel %vm701_vm2, %v2369_v37, %v698_v8  ;;  %806 = vst.msk [vmem:[#allocation2 + $0x10] sm:$0xf] %vm801_vm1, %v797_v15  ;;  %v705_v25 = vmul.f32 %v2375_v11, %v704_v18  ;;  %vm750_vm3 = vweird.f32 %v2373_v3 }
 0x127   : > { %v764_v20 = vmul.f32 %v702_v17, %v2716_v43  ;;  %v762_v21 = vsel %vm2809_vm15, %v2371_v45, %v758_v13  ;;  %v746_v23 = vmul.f32 0.5, %v745_v14  ;;  %802 = vst.msk [vmem:[#allocation2] sm:$0xf] %vm801_vm1, %v793_v24  ;;  %vm710_vm5 = vweird.f32 %v2375_v11  ;;  %vm751_vm7 = vmor %vm749_vm6, %vm750_vm3 }
 0x128   : > { %v770_v19 = vmul.f32 %v762_v21, %v2712_v41  ;;  %v779_v26 = vmul.f32 %v2783_v48, %v768_v16  ;;  %v706_v30 = vmul.f32 0.5, %v705_v25  ;;  %vm2836_vm8 = vmor %vm709_vm4, %vm710_vm5  ;;  %v830_v49 = vunpack.c.l.b16 %v797_v15 }
 0x129   : > { %v747_v27 = vsub.f32 1.5, %v746_v23  ;;  %v775_v42 = vmul.f32 %v2783_v48, %v764_v20  ;;  %v826_v54 = vunpack.c.l.b16 %v793_v24  ;;  %vm719_vm9 = vweird.f32 %v2801_v29 }
 0x12a   : > { %v2377_v43 = vpop.eup %2376  ;;  %v790_v31 = vadd.f32 %v2794_v55, %v779_v26  ;;  %v781_v32 = vmul.f32 %v2783_v48, %v770_v19  ;;  %v707_v35 = vsub.f32 1.5, %v706_v30 }
 0x12b   : > { %v748_v33 = vmul.f32 %v2373_v3, %v747_v27  ;;  %v714_v41 = vmul.f32 %v2377_v43, %v2801_v29  ;;  %v786_v34 = vadd.f32 %v2794_v55, %v775_v42  ;;  %vm720_vm10 = vweird.f32 %v2377_v43 }
 0x12c   : > { %v798_v37 = vpack.c.bf16 %v790_v31, %v790_v31  ;;  %v792_v38 = vadd.f32 %v2794_v55, %v781_v32  ;;  %v708_v50 = vmul.f32 %v2375_v11, %v707_v35  ;;  %vm721_vm11 = vmor %vm719_vm9, %vm720_vm10 }
 0x12d   : > { %v752_v39 = vsel %vm751_vm7, %v2373_v3, %v748_v33  ;;  %v715_v46 = vmul.f32 %v2377_v43, %v714_v41  ;;  %v794_v47 = vpack.c.bf16 %v786_v34, %v786_v34 }
 0x12e   : > { %v769_v36 = vmul.f32 %v752_v39, %v2718_v44  ;;  %807 = vst.msk [vmem:[#allocation2 + $0x14] sm:$0xf] %vm801_vm1, %v798_v37  ;;  %v831_v51 = vunpack.c.l.b16 %v798_v37  ;;  %v800_v52 = vpack.c.bf16 %v792_v38, %v792_v38  ;;  %v712_v40 = vsel %vm2836_vm8, %v2375_v11, %v708_v50 }
 0x12f   : > { %v716_v53 = vmul.f32 0.5, %v715_v46  ;;  %803 = vst.msk [vmem:[#allocation2 + $0x4] sm:$0xf] %vm801_vm1, %v794_v47  ;;  %v827_v57 = vunpack.c.l.b16 %v794_v47  ;;  %v765_v44 = vmul.f32 %v712_v40, %v2733_v56 }
 0x130   : > { %v836_v58 = vpack.c.b16 %v831_v51, %v830_v49  ;;  %v780_v60 = vmul.f32 %v2783_v48, %v769_v36  ;;  %809 = vst.msk [vmem:[#allocation2 + $0x1c] sm:$0xf] %vm801_vm1, %v800_v52  ;;  %v833_v9 = vunpack.c.l.b16 %v800_v52 }
 0x131   : > { %v717_v61 = vsub.f32 1.5, %v716_v53  ;;  %v834_v62 = vpack.c.b16 %v827_v57, %v826_v54  ;;  %v776_v0 = vmul.f32 %v2783_v48, %v765_v44 }
 0x132   : > { %2135 = vmatmul.msk.bf16.vlgmr.msra.gmra.mxu2 %vm587_vm0, %v836_v58  ;;  %2147 = vmatmul.msk.bf16.vlgmr.msra.gmra.mxu3 %vm587_vm0, %v836_v58  ;;  %v791_v28 = vadd.f32 %v2794_v55, %v780_v60 }
 0x133   : > { %v718_v63 = vmul.f32 %v2377_v43, %v717_v61  ;;  %2133 = vmatmul.msk.bf16.vlgmr.msra.gmra.mxu0 %vm587_vm0, %v834_v62  ;;  %2145 = vmatmul.msk.bf16.vlgmr.msra.gmra.mxu1 %vm587_vm0, %v834_v62  ;;  %v787_v2 = vadd.f32 %v2794_v55, %v776_v0 }
 0x134   : > { %v799_v56 = vpack.c.bf16 %v791_v28, %v791_v28 }
 0x135   : > { %v722_v1 = vsel %vm721_vm11, %v2377_v43, %v718_v63  ;;  %v795_v4 = vpack.c.bf16 %v787_v2, %v787_v2 }
 0x136   : > { %v766_v3 = vmul.f32 %v722_v1, %v2738_v59  ;;  %808 = vst.msk [vmem:[#allocation2 + $0x18] sm:$0xf] %vm801_vm1, %v799_v56  ;;  %v832_v22 = vunpack.c.l.b16 %v799_v56  ;;  %v2358_v59 = vld [vmem:[%s3265_s6] ss:$0 sm:$0xff] }
 0x137   : > { %804 = vst.msk [vmem:[#allocation2 + $0x8] sm:$0xf] %vm801_vm1, %v795_v4  ;;  %v828_v29 = vunpack.c.l.b16 %v795_v4 }
 0x138   : > { %v777_v5 = vmul.f32 %v2783_v48, %v766_v3  ;;  %v837_v11 = vpack.c.b16 %v833_v9, %v832_v22  ;;  %v2359_v48 = vld [vmem:[%s3267_s8] ss:$0 sm:$0xff] }
 0x13a   : > { %v788_v6 = vadd.f32 %v2794_v55, %v777_v5 }
 0x13c   : > { %v796_v7 = vpack.c.bf16 %v788_v6, %v788_v6 }
 0x13e   : > { %805 = vst.msk [vmem:[#allocation2 + $0xc] sm:$0xf] %vm801_vm1, %v796_v7  ;;  %v829_v8 = vunpack.c.l.b16 %v796_v7 }
 0x140   : > { %v835_v10 = vpack.c.b16 %v829_v8, %v828_v29 }
 0x142   : > { %2136 = vmatmul.msk.bf16.gmra.mxu2 %vm587_vm0, %v837_v11  ;;  %2148 = vmatmul.msk.bf16.gmra.mxu3 %vm587_vm0, %v837_v11 }
 0x143   : > { %2134 = vmatmul.msk.bf16.gmra.mxu0 %vm587_vm0, %v835_v10  ;;  %2146 = vmatmul.msk.bf16.gmra.mxu1 %vm587_vm0, %v835_v10 }
 0x1b0   : > { %v871_v55 = vpop.f32.mrf.mxu0  ;;  %v936_v12 = vpop.f32.mrf.mxu1 }
 0x1b1   : > { %v872_v13 = vadd.f32 %v2358_v59, %v871_v55  ;;  %v937_v14 = vadd.f32 %v2359_v48, %v936_v12 }
 0x1b3   : > { %v891_v15 = vpack.c.bf16 %v872_v13, %v872_v13  ;;  %v956_v16 = vpack.c.bf16 %v937_v14, %v937_v14 }
 0x1b5   : > { %899 = vst.msk [vmem:[#allocation3] sm:$0xf] %vm801_vm1, %v891_v15  ;;  %v881_v17 = vpop.f32.mrf.mxu2  ;;  %v946_v18 = vpop.f32.mrf.mxu3 }
 0x1b6   : > { %964 = vst.msk [vmem:[#allocation4] sm:$0xf] %vm801_vm1, %v956_v16  ;;  %v882_v20 = vadd.f32 %v2358_v59, %v881_v17  ;;  %v947_v21 = vadd.f32 %v2359_v48, %v946_v18 }
 0x1b8   : > { %v895_v23 = vpack.c.bf16 %v882_v20, %v882_v20  ;;  %v960_v24 = vpack.c.bf16 %v947_v21, %v947_v21  ;;  %v873_v19 = vpop.f32.mrf.mxu0  ;;  %v938_v25 = vpop.f32.mrf.mxu1 }
 0x1b9   : > { %v874_v26 = vadd.f32 %v2358_v59, %v873_v19  ;;  %v939_v27 = vadd.f32 %v2359_v48, %v938_v25 }
 0x1ba   : > { %903 = vst.msk [vmem:[#allocation3 + $0x10] sm:$0xf] %vm801_vm1, %v895_v23 }
 0x1bb   : > { %968 = vst.msk [vmem:[#allocation4 + $0x10] sm:$0xf] %vm801_vm1, %v960_v24  ;;  %v892_v42 = vpack.c.bf16 %v874_v26, %v874_v26  ;;  %v957_v43 = vpack.c.bf16 %v939_v27, %v939_v27 }
 0x1bd   : > { %900 = vst.msk [vmem:[#allocation3 + $0x4] sm:$0xf] %vm801_vm1, %v892_v42  ;;  %v883_v30 = vpop.f32.mrf.mxu2  ;;  %v948_v31 = vpop.f32.mrf.mxu3 }
 0x1be   : > { %965 = vst.msk [vmem:[#allocation4 + $0x4] sm:$0xf] %vm801_vm1, %v957_v43  ;;  %v884_v32 = vadd.f32 %v2358_v59, %v883_v30  ;;  %v949_v33 = vadd.f32 %v2359_v48, %v948_v31 }
 0x1c0   : > { %v896_v41 = vpack.c.bf16 %v884_v32, %v884_v32  ;;  %v961_v34 = vpack.c.bf16 %v949_v33, %v949_v33  ;;  %v876_v35 = vpop.f32.mrf.mxu0  ;;  %v941_v37 = vpop.f32.mrf.mxu1 }
 0x1c1   : > { %v877_v38 = vadd.f32 %v2358_v59, %v876_v35  ;;  %v942_v39 = vadd.f32 %v2359_v48, %v941_v37 }
 0x1c2   : > { %904 = vst.msk [vmem:[#allocation3 + $0x14] sm:$0xf] %vm801_vm1, %v896_v41 }
 0x1c3   : > { %969 = vst.msk [vmem:[#allocation4 + $0x14] sm:$0xf] %vm801_vm1, %v961_v34  ;;  %v893_v45 = vpack.c.bf16 %v877_v38, %v877_v38  ;;  %v958_v46 = vpack.c.bf16 %v942_v39, %v942_v39 }
 0x1c5   : > { %901 = vst.msk [vmem:[#allocation3 + $0x8] sm:$0xf] %vm801_vm1, %v893_v45  ;;  %v886_v47 = vpop.f32.mrf.mxu2  ;;  %v951_v49 = vpop.f32.mrf.mxu3 }
 0x1c6   : > { %966 = vst.msk [vmem:[#allocation4 + $0x8] sm:$0xf] %vm801_vm1, %v958_v46  ;;  %v887_v36 = vadd.f32 %v2358_v59, %v886_v47  ;;  %v952_v50 = vadd.f32 %v2359_v48, %v951_v49 }
 0x1c8   : > { %v897_v51 = vpack.c.bf16 %v887_v36, %v887_v36  ;;  %v962_v52 = vpack.c.bf16 %v952_v50, %v952_v50  ;;  %v878_v53 = vpop.f32.mrf.mxu0  ;;  %v943_v54 = vpop.f32.mrf.mxu1 }
 0x1c9   : > { %v879_v57 = vadd.f32 %v2358_v59, %v878_v53  ;;  %v944_v40 = vadd.f32 %v2359_v48, %v943_v54 }
 0x1ca   : > { %905 = vst.msk [vmem:[#allocation3 + $0x18] sm:$0xf] %vm801_vm1, %v897_v51 }
 0x1cb   : > { %970 = vst.msk [vmem:[#allocation4 + $0x18] sm:$0xf] %vm801_vm1, %v962_v52  ;;  %v894_v58 = vpack.c.bf16 %v879_v57, %v879_v57  ;;  %v959_v60 = vpack.c.bf16 %v944_v40, %v944_v40 }
 0x1cd   : > { %902 = vst.msk [vmem:[#allocation3 + $0xc] sm:$0xf] %vm801_vm1, %v894_v58  ;;  %v888_v44 = vpop.f32.mrf.mxu2  ;;  %v953_v61 = vpop.f32.mrf.mxu3 }
 0x1ce   : > { %967 = vst.msk [vmem:[#allocation4 + $0xc] sm:$0xf] %vm801_vm1, %v959_v60  ;;  %v889_v62 = vadd.f32 %v2358_v59, %v888_v44  ;;  %v954_v28 = vadd.f32 %v2359_v48, %v953_v61 }
 0x1d0   : > { %v898_v63 = vpack.c.bf16 %v889_v62, %v889_v62  ;;  %v963_v0 = vpack.c.bf16 %v954_v28, %v954_v28 }
 0x1d2   : > { %906 = vst.msk [vmem:[#allocation3 + $0x1c] sm:$0xf] %vm801_vm1, %v898_v63 }
 0x1d3   : > { %971 = vst.msk [vmem:[#allocation4 + $0x1c] sm:$0xf] %vm801_vm1, %v963_v0 }
 0x1d4 PF: > { %v2279_v56 = vld [vmem:[%s3262_s3 + $0x8] sm:$0xff]  ;;  %s2149_s20 = sshll.u32 %s2518_s24, 5  ;;  %vm1092_vm0 = vcmask 64512   ;;  %v2278_v2 = vld [vmem:[%s3262_s3] sm:$0xff]  ;;  %vm1016_vm12 = vcmask 261120   ;;  %v2282_v5 = vld [vmem:[#allocation3 + $0x10] sm:$0xff] }
 0x1d5   : > { %s978_s25 = sshra.s32 %s2149_s20, 3  ;;  %1029 = vmatpush.bf16.msra.mxu0 %v2279_v56  ;;  %s2537_s29 = smov 120   ;;  %v1106_v6 = vsel %vm1092_vm0, %v2282_v5, 0  ;;  %v2281_v22 = vld [vmem:[#allocation3 + $0x8] sm:$0xff]  ;;  %v2912_v8 = vld [vmem:[#allocation3] sm:$0xff]  ;;  %vm1130_vm13 = vcmask 523264  }
 0x1d6   : > { %s2150_s26 = sshll.u32 %s978_s25, 2  ;;  %s2538_s30 = smov 112   ;;  %1232 = vrot.lane.b32.xlu0 %v2281_v22, %s2537_s29  ;;  %v1103_v29 = vsel %vm1092_vm0, %v2281_v22, 0  ;;  %1230 = vrot.lane.b32.xlu1 %v2912_v8, %s2537_s29  ;;  %v1100_v9 = vsel %vm1092_vm0, %v2912_v8, 0  ;;  %v2408_v11 = vld [vmem:[%s3263_s4] ss:$0 sm:$0xff] }
 0x1d7   : > { %s981_s27 = scalar_lea.vmem [#allocation2], %s2150_s26  ;;  %s2539_s1 = smov 104   ;;  %v2947_v36 = vld [vmem:[#allocation4 + $0x10] sm:$0xff]  ;;  %v2951_v52 = vld [vmem:[#allocation4 + $0x8] sm:$0xff]  ;;  %v2954_v53 = vld [vmem:[#allocation4] sm:$0xff]  ;;  %vm1674_vm14 = vcmask 130048  }
 0x1d8   : > { %v2276_v4 = vld [vmem:[%s981_s27] sm:$0xff]  ;;  %v2277_v7 = vld [vmem:[%s981_s27 + $0x8] sm:$0xff]  ;;  %s2540_s21 = smov 8   ;;  %s2541_s23 = smov 16   ;;  %vm1679_vm15 = vcmask 195584  }
 0x1d9   : > { %v2894_v1 = vld [vmem:[#allocation3 + $0x18] sm:$0xff]  ;;  %1030 = vmatpush.bf16.msra.mxu0 %v2278_v2  ;;  %s2542_s25 = smov 24   ;;  %s973_s18 = scalar_lea.vmem %s2670_s22, %s2149_s20 }
 0x1da   : > { %v1109_v3 = vsel %vm1092_vm0, %v2894_v1, 0  ;;  %1236 = vrot.lane.b32.xlu2 %v2894_v1, %s2537_s29  ;;  %v2944_v49 = vld [vmem:[#allocation4 + $0x18] sm:$0xff] }
 0x1db   : > { %2304 = vmatpush.bf16.xpose.msra.mxu1 %v1109_v3  ;;  %1211 = vmatpush.bf16.msra.mxu2 %v2944_v49 }
 0x1dc   : > { %2167 = vmatmul.msk.bf16.vlgmr.msra.gmra.mxu0 %vm1016_vm12, %v2276_v4 }
 0x1dd   : > { %1115 = vmatpush.bf16.xpose.msrb.mxu0 %v1109_v3 }
 0x1de   : > { %1368 = vrot.lane.b32.xlu0 %v2894_v1, %s2538_s30 }
 0x1df   : > { %1212 = vmatpush.bf16.msra.mxu2 %v2947_v36 }
 0x1e2   : > { %1234 = vrot.lane.b32.xlu2 %v2282_v5, %s2537_s29 }
 0x1e3   : > { %2305 = vmatpush.bf16.xpose.msra.mxu1 %v1106_v6  ;;  %1213 = vmatpush.bf16.msra.mxu2 %v2951_v52 }
 0x1e5   : > { %1116 = vmatpush.bf16.xpose.msrb.mxu0 %v1106_v6 }
 0x1e7   : > { %1214 = vmatpush.bf16.msra.mxu2 %v2954_v53 }
 0x1ea   : > { %1366 = vrot.lane.b32.xlu2 %v2282_v5, %s2538_s30 }
 0x1eb   : > { %2306 = vmatpush.bf16.xpose.msra.mxu1 %v1103_v29 }
 0x1ec   : > { %2168 = vmatmul.msk.bf16.gmra.mxu0 %vm1016_vm12, %v2277_v7 }
 0x1ed   : > { %1117 = vmatpush.bf16.xpose.msrb.mxu0 %v1103_v29 }
 0x1f2   : > { %1498 = vrot.lane.b32.xlu2 %v2282_v5, %s2539_s1 }
 0x1f3   : > { %2307 = vmatpush.bf16.xpose.msra.mxu1 %v1100_v9 }
 0x1f5   : > { %1118 = vmatpush.bf16.xpose.msrb.mxu0 %v1100_v9 }
 0x1fa   : > { %1364 = vrot.lane.b32.xlu2 %v2281_v22, %s2538_s30 }
 0x202   : > { %1496 = vrot.lane.b32.xlu2 %v2281_v22, %s2539_s1 }
 0x234   : > { %v1237_v59 = vpop.permute.xlu2 %1236 }
 0x235   : > { %v1254_v48 = vsel %vm1092_vm0, %v1237_v59, 0 }
 0x236   : > { %1260 = vmatpush.bf16.xpose.msra.mxu3 %v1254_v48 }
 0x23c   : > { %v1235_v15 = vpop.permute.xlu2 %1234 }
 0x23d   : > { %v1251_v16 = vsel %vm1092_vm0, %v1235_v15, 0 }
 0x23e   : > { %1261 = vmatpush.bf16.xpose.msra.mxu3 %v1251_v16 }
 0x248   : > { %v1233_v31 = vpop.permute.xlu0 %1232  ;;  %v1231_v33 = vpop.permute.xlu1 %1230 }
 0x249   : > { %v1248_v32 = vsel %vm1092_vm0, %v1233_v31, 0  ;;  %v1245_v41 = vsel %vm1092_vm0, %v1231_v33, 0 }
 0x24a   : > { %1262 = vmatpush.bf16.xpose.msra.mxu3 %v1248_v32 }
 0x250   : > { %v1369_v34 = vpop.permute.xlu0 %1368 }
 0x251   : > { %v1386_v54 = vsel %vm1092_vm0, %v1369_v34, 0 }
 0x252   : > { %1263 = vmatpush.bf16.xpose.msra.mxu3 %v1245_v41  ;;  %1392 = vmatpush.bf16.xpose.msrb.mxu2 %v1386_v54 }
 0x259   : > { %v1032_v10 = vpop.f32.mrf.mxu0 }
 0x25a   : > { %v1033_v55 = vadd.f32 %v2408_v11, %v1032_v10 }
 0x25c   : > { %v1042_v13 = vpack.c.bf16 %v1033_v55, %v1033_v55 }
 0x25e   : > { %v1066_v18 = vunpack.c.l.b16 %v1042_v13 }
 0x261   : > { %v1034_v12 = vpop.f32.mrf.mxu0 }
 0x262   : > { %v1035_v14 = vadd.f32 %v2408_v11, %v1034_v12 }
 0x264   : > { %v1043_v17 = vpack.c.bf16 %v1035_v14, %v1035_v14 }
 0x266   : > { %v1067_v20 = vunpack.c.l.b16 %v1043_v17 }
 0x268   : > { %v2925_v21 = vpack.c.b16 %v1067_v20, %v1066_v18 }
 0x269   : > { %v1037_v23 = vpop.f32.mrf.mxu0 }
 0x26a   : > { %1226 = vrot.lane.b32.xlu0 %v2925_v21, %s2537_s29  ;;  %2185 = vmatmul.msk.bf16.vlgmr.msrb.gmra.mxu0 %vm1092_vm0, %v2925_v21  ;;  %v1038_v24 = vadd.f32 %v2408_v11, %v1037_v23 }
 0x26c   : > { %v1044_v25 = vpack.c.bf16 %v1038_v24, %v1038_v24 }
 0x26e   : > { %v1068_v42 = vunpack.c.l.b16 %v1044_v25 }
 0x271   : > { %v1039_v19 = vpop.f32.mrf.mxu0 }
 0x272   : > { %v1040_v26 = vadd.f32 %v2408_v11, %v1039_v19 }
 0x274   : > { %v1045_v27 = vpack.c.bf16 %v1040_v26, %v1040_v26 }
 0x276   : > { %v1069_v43 = vunpack.c.l.b16 %v1045_v27 }
 0x278   : > { %v2931_v30 = vpack.c.b16 %v1069_v43, %v1068_v42 }
 0x27a   : > { %2186 = vmatmul.msk.bf16.vlgmr.msra.gmra.mxu1 %vm1092_vm0, %v2931_v30 }
 0x2dc   : > { %v1227_v35 = vpop.permute.xlu0 %1226 }
 0x2dd   : > { %2205 = vmatmul.msk.bf16.vlgmr.msra.gmra.mxu3 %vm1092_vm0, %v1227_v35 }
 0x2e7   : > { %v1120_v37 = vpop.f32.mrf.mxu0 }
 0x2e8   : > { %v1131_v38 = vsel %vm1130_vm13, %v1120_v37, -inf }
 0x2e9   : > { %1132 = vmax.xlane.f32.xlu0 %v1131_v38 }
 0x2ef   : > { %v1122_v39 = vpop.f32.mrf.mxu0 }
 0x2f0   : > { %v1134_v45 = vsel %vm1130_vm13, %v1122_v39, -inf }
 0x2f1   : > { %1135 = vmax.xlane.f32.xlu0 %v1134_v45 }
 0x2f7   : > { %v1125_v46 = vpop.f32.mrf.mxu1 }
 0x2f8   : > { %v1137_v47 = vsel %vm1130_vm13, %v1125_v46, -inf }
 0x2f9   : > { %1138 = vmax.xlane.f32.xlu1 %v1137_v47 }
 0x2ff   : > { %v1127_v50 = vpop.f32.mrf.mxu1 }
 0x300   : > { %v1140_v51 = vsel %vm1130_vm13, %v1127_v50, -inf }
 0x301   : > { %1141 = vmax.xlane.f32.xlu1 %v1140_v51 }
 0x305   : > { %1228 = vrot.lane.b32.xlu0 %v2931_v30, %s2537_s29 }
 0x31a   : > { %1500 = vrot.lane.b32.xlu1 %v2894_v1, %s2539_s1  ;;  %v1367_v1 = vpop.permute.xlu2 %1366 }
 0x31b   : > { %v1383_v6 = vsel %vm1092_vm0, %v1367_v1, 0 }
 0x31c   : > { %1393 = vmatpush.bf16.xpose.msrb.mxu2 %v1383_v6 }
 0x322   : > { %v1499_v10 = vpop.permute.xlu2 %1498 }
 0x323   : > { %v1515_v14 = vsel %vm1092_vm0, %v1499_v10, 0 }
 0x32a   : > { %v1365_v48 = vpop.permute.xlu2 %1364 }
 0x32b   : > { %v1380_v55 = vsel %vm1092_vm0, %v1365_v48, 0 }
 0x32c   : > { %1394 = vmatpush.bf16.xpose.msrb.mxu2 %v1380_v55 }
 0x332   : > { %v1497_v15 = vpop.permute.xlu2 %1496 }
 0x333   : > { %v1512_v16 = vsel %vm1092_vm0, %v1497_v15, 0 }
 0x35c   : > { %v1133_v57 = vpop.xlane.xlu0 %1132 }
 0x35d   : > { %v1143_v40 = vsub.f32 %v1120_v37, %v1133_v57 }
 0x35f   : > { %v1147_v58 = vmul.f32 1.442695, %v1143_v40 }
 0x360   : > { %v2984_v17 = vpop.f32.mrf.mxu3 }
 0x361   : > { %2414 = vpow2.f32 %v1147_v58 }
 0x364   : > { %v1136_v60 = vpop.xlane.xlu0 %1135 }
 0x365   : > { %v1144_v44 = vsub.f32 %v1122_v39, %v1136_v60 }
 0x367   : > { %v2415_v61 = vpop.eup %2414  ;;  %v1149_v62 = vmul.f32 1.442695, %v1144_v44 }
 0x368   : > { %v1155_v28 = vsel %vm1130_vm13, %v2415_v61, 0.0  ;;  %v2986_v18 = vpop.f32.mrf.mxu3 }
 0x369   : > { %2416 = vpow2.f32 %v1149_v62  ;;  %1156 = vadd.xlane.f32.xlu1 %v1155_v28  ;;  %v1278_v20 = vsel %vm1130_vm13, %v2986_v18, -inf }
 0x36c   : > { %v1139_v63 = vpop.xlane.xlu1 %1138 }
 0x36d   : > { %v1145_v0 = vsub.f32 %v1125_v46, %v1139_v63 }
 0x36f   : > { %v2417_v56 = vpop.eup %2416  ;;  %v1151_v2 = vmul.f32 1.442695, %v1145_v0 }
 0x370   : > { %v1158_v3 = vsel %vm1130_vm13, %v2417_v56, 0.0 }
 0x371   : > { %2418 = vpow2.f32 %v1151_v2  ;;  %1159 = vadd.xlane.f32.xlu2 %v1158_v3 }
 0x374   : > { %v1142_v4 = vpop.xlane.xlu1 %1141 }
 0x375   : > { %v1146_v5 = vsub.f32 %v1127_v50, %v1142_v4 }
 0x377   : > { %v2419_v7 = vpop.eup %2418  ;;  %v1153_v22 = vmul.f32 1.442695, %v1146_v5  ;;  %v1229_v29 = vpop.permute.xlu0 %1228 }
 0x378   : > { %2206 = vmatmul.msk.bf16.gmra.mxu3 %vm1092_vm0, %v1229_v29  ;;  %v1161_v9 = vsel %vm1130_vm13, %v2419_v7, 0.0 }
 0x379   : > { %2420 = vpow2.f32 %v1153_v22  ;;  %1162 = vadd.xlane.f32.xlu0 %v1161_v9 }
 0x37f   : > { %v2421_v11 = vpop.eup %2420 }
 0x380   : > { %v1164_v59 = vsel %vm1130_vm13, %v2421_v11, 0.0 }
 0x381   : > { %1165 = vadd.xlane.f32.xlu1 %v1164_v59 }
 0x389   : > { %1494 = vrot.lane.b32.xlu2 %v2912_v8, %s2539_s1 }
 0x38c   : > { %v1501_v12 = vpop.permute.xlu1 %1500 }
 0x38d   : > { %1490 = vrot.lane.b32.xlu0 %v2925_v21, %s2539_s1  ;;  %v1518_v13 = vsel %vm1092_vm0, %v1501_v12, 0 }
 0x38e   : > { %1524 = vmatpush.bf16.xpose.msrb.mxu3 %v1518_v13 }
 0x391   : > { %1358 = vrot.lane.b32.xlu2 %v2925_v21, %s2538_s30  ;;  %v1275_v21 = vsel %vm1130_vm13, %v2984_v17, -inf }
 0x395   : > { %1492 = vrot.lane.b32.xlu0 %v2931_v30, %s2539_s1 }
 0x396   : > { %1525 = vmatpush.bf16.xpose.msrb.mxu3 %v1515_v14 }
 0x399   : > { %1360 = vrot.lane.b32.xlu2 %v2931_v30, %s2538_s30 }
 0x39a   : > { %1362 = vrot.lane.b32.xlu1 %v2912_v8, %s2538_s30 }
 0x39e   : > { %1526 = vmatpush.bf16.xpose.msrb.mxu3 %v1512_v16 }
 0x3c2   : > { %1279 = vmax.xlane.f32.xlu2 %v1278_v20 }
 0x3c4   : > { %1276 = vmax.xlane.f32.xlu1 %v1275_v21 }
 0x3da   : > { %1325 = vrot.lane.b32.xlu2 %v2947_v36, %s2537_s29 }
 0x3dc   : > { %v1157_v23 = vpop.xlane.xlu1 %1156 }
 0x3dd   : > { %2422 = vrcp.f32 %v1157_v23 }
 0x3e2   : > { %1459 = vrot.lane.b32.xlu2 %v2944_v49, %s2538_s30 }
 0x3e3   : > { %v2423_v24 = vpop.eup %2422 }
 0x3e4   : > { %v1160_v8 = vpop.xlane.xlu2 %1159  ;;  %v1171_v26 = vmul.f32 %v2423_v24, %v2415_v61 }
 0x3e5   : > { %2424 = vrcp.f32 %v1160_v8 }
 0x3ea   : > { %1591 = vrot.lane.b32.xlu2 %v2944_v49, %s2539_s1 }
 0x3eb   : > { %v2425_v19 = vpop.eup %2424 }
 0x3ec   : > { %v1495_v25 = vpop.permute.xlu2 %1494  ;;  %v1172_v27 = vmul.f32 %v2425_v19, %v2417_v56  ;;  %v1163_v30 = vpop.xlane.xlu0 %1162 }
 0x3ed   : > { %v1509_v42 = vsel %vm1092_vm0, %v1495_v25, 0  ;;  %2426 = vrcp.f32 %v1163_v30 }
 0x3ee   : > { %v1175_v43 = vpack.c.bf16 %v1172_v27, %v1171_v26  ;;  %1527 = vmatpush.bf16.xpose.msrb.mxu3 %v1509_v42 }
 0x3f0   : > { %2203 = vmatmul.msk.bf16.vlgmr.msra.gmra.mxu2 %vm1130_vm13, %v1175_v43 }
 0x3f3   : > { %v2427_v32 = vpop.eup %2426 }
 0x3f4   : > { %v1166_v31 = vpop.xlane.xlu1 %1165  ;;  %v1173_v35 = vmul.f32 %v2427_v32, %v2419_v7  ;;  %v1359_v54 = vpop.permute.xlu2 %1358 }
 0x3f5   : > { %2428 = vrcp.f32 %v1166_v31 }
 0x3fb   : > { %v2429_v33 = vpop.eup %2428  ;;  %v1270_v41 = vpop.f32.mrf.mxu3 }
 0x3fc   : > { %v1281_v34 = vsel %vm1130_vm13, %v1270_v41, -inf  ;;  %v1174_v37 = vmul.f32 %v2429_v33, %v2421_v11  ;;  %v1361_v57 = vpop.permute.xlu2 %1360 }
 0x3fd   : > { %1282 = vmax.xlane.f32.xlu0 %v1281_v34 }
 0x3fe   : > { %v1176_v38 = vpack.c.bf16 %v1174_v37, %v1173_v35 }
 0x3ff   : > { %v1491_v39 = vpop.permute.xlu0 %1490 }
 0x400   : > { %2204 = vmatmul.msk.bf16.gmra.mxu2 %vm1130_vm13, %v1176_v38  ;;  %2213 = vmatmul.msk.bf16.vlgmr.msrb.gmra.mxu3 %vm1092_vm0, %v1491_v39 }
 0x403   : > { %v3003_v45 = vpop.f32.mrf.mxu3 }
 0x404   : > { %v1284_v46 = vsel %vm1130_vm13, %v3003_v45, -inf }
 0x405   : > { %1285 = vmax.xlane.f32.xlu1 %v1284_v46 }
 0x407   : > { %v1493_v51 = vpop.permute.xlu0 %1492 }
 0x40c   : > { %v1363_v47 = vpop.permute.xlu1 %1362 }
 0x40d   : > { %v1377_v50 = vsel %vm1092_vm0, %v1363_v47, 0 }
 0x40e   : > { %1395 = vmatpush.bf16.xpose.msrb.mxu2 %v1377_v50 }
 0x410   : > { %2214 = vmatmul.msk.bf16.gmra.mxu3 %vm1092_vm0, %v1493_v51 }
 0x411   : > { %1323 = vrot.lane.b32.xlu0 %v2951_v52, %s2537_s29 }
 0x415   : > { %2209 = vmatmul.msk.bf16.vlgmr.msrb.gmra.mxu2 %vm1092_vm0, %v1359_v54 }
 0x419   : > { %1457 = vrot.lane.b32.xlu0 %v2947_v36, %s2538_s30 }
 0x41e   : > { %1327 = vrot.lane.b32.xlu1 %v2944_v49, %s2537_s29 }
 0x425   : > { %2210 = vmatmul.msk.bf16.gmra.mxu2 %vm1092_vm0, %v1361_v57 }
 0x426   : > { %1321 = vrot.lane.b32.xlu1 %v2954_v53, %s2537_s29 }
 0x435   : > { %v1280_v63 = vpop.xlane.xlu2 %1279 }
 0x436   : > { %v1288_v29 = vsub.f32 %v2986_v18, %v1280_v63 }
 0x437   : > { %v1277_v61 = vpop.xlane.xlu1 %1276 }
 0x438   : > { %v1287_v2 = vsub.f32 %v2984_v17, %v1277_v61  ;;  %v1293_v48 = vmul.f32 1.442695, %v1288_v29 }
 0x43a   : > { %v1291_v6 = vmul.f32 1.442695, %v1287_v2 }
 0x43d   : > { %v1326_v5 = vpop.permute.xlu2 %1325 }
 0x445   : > { %v1460_v11 = vpop.permute.xlu2 %1459 }
 0x446   : > { %1475 = vmatpush.bf16.msrb.mxu1 %v1460_v11 }
 0x44d   : > { %v1592_v18 = vpop.permute.xlu2 %1591 }
 0x470   : > { %v1283_v40 = vpop.xlane.xlu0 %1282 }
 0x471   : > { %v1289_v58 = vsub.f32 %v1270_v41, %v1283_v40 }
 0x473   : > { %v3019_v60 = vpop.f32.mrf.mxu2  ;;  %v1295_v44 = vmul.f32 1.442695, %v1289_v58 }
 0x475   : > { %2430 = vpow2.f32 %v1295_v44 }
 0x476   : > { %2432 = vpow2.f32 %v1291_v6 }
 0x477   : > { %2434 = vpow2.f32 %v1293_v48 }
 0x478   : > { %v1286_v0 = vpop.xlane.xlu1 %1285 }
 0x479   : > { %v1290_v13 = vsub.f32 %v3003_v45, %v1286_v0 }
 0x47b   : > { %v3025_v49 = vpop.f32.mrf.mxu2  ;;  %v3027_v56 = vpop.eup %2430  ;;  %v1297_v20 = vmul.f32 1.442695, %v1290_v13 }
 0x47c   : > { %v1305_v4 = vsel %vm1130_vm13, %v3027_v56, 0.0  ;;  %v3043_v55 = vpop.eup %2432 }
 0x47d   : > { %v1299_v16 = vsel %vm1130_vm13, %v3043_v55, 0.0  ;;  %v2435_v21 = vpop.eup %2434  ;;  %2436 = vpow2.f32 %v1297_v20 }
 0x47e   : > { %v1302_v24 = vsel %vm1130_vm13, %v2435_v21, 0.0 }
 0x483   : > { %v3021_v62 = vpop.f32.mrf.mxu3  ;;  %v3036_v7 = vpop.f32.mrf.mxu2 }
 0x484   : > { %v1539_v28 = vsel %vm1130_vm13, %v3021_v62, -inf  ;;  %v1324_v59 = vpop.permute.xlu0 %1323  ;;  %v2437_v19 = vpop.eup %2436 }
 0x485   : > { %1540 = vmax.xlane.f32.xlu1 %v1539_v28  ;;  %v1308_v25 = vsel %vm1130_vm13, %v2437_v19, 0.0 }
 0x48b   : > { %v3030_v3 = vpop.f32.mrf.mxu3  ;;  %v3045_v12 = vpop.f32.mrf.mxu2 }
 0x48c   : > { %v1542_v1 = vsel %vm1130_vm13, %v3030_v3, -inf  ;;  %v1458_v30 = vpop.permute.xlu0 %1457 }
 0x48d   : > { %1543 = vmax.xlane.f32.xlu2 %v1542_v1  ;;  %1306 = vadd.xlane.f32.xlu1 %v1305_v4 }
 0x48e   : > { %1476 = vmatpush.bf16.msrb.mxu1 %v1458_v30 }
 0x490   : > { %v1328_v22 = vpop.permute.xlu1 %1327 }
 0x491   : > { %1343 = vmatpush.bf16.msra.mxu0 %v1328_v22 }
 0x493   : > { %v3039_v9 = vpop.f32.mrf.mxu3 }
 0x494   : > { %v1545_v10 = vsel %vm1130_vm13, %v3039_v9, -inf }
 0x495   : > { %1546 = vmax.xlane.f32.xlu2 %v1545_v10  ;;  %1344 = vmatpush.bf16.msra.mxu0 %v1326_v5 }
 0x498   : > { %v1322_v15 = vpop.permute.xlu1 %1321  ;;  %v1397_v23 = vpop.f32.mrf.mxu2 }
 0x499   : > { %1345 = vmatpush.bf16.msra.mxu0 %v1324_v59  ;;  %v1407_v8 = vsel %vm1130_vm13, %v1397_v23, -inf }
 0x49b   : > { %v3048_v14 = vpop.f32.mrf.mxu3 }
 0x49c   : > { %v1548_v17 = vsel %vm1130_vm13, %v3048_v14, -inf }
 0x49d   : > { %1300 = vadd.xlane.f32.xlu2 %v1299_v16  ;;  %1549 = vmax.xlane.f32.xlu0 %v1548_v17 }
 0x49e   : > { %1346 = vmatpush.bf16.msra.mxu0 %v1322_v15 }
 0x4a0   : > { %v1399_v26 = vpop.f32.mrf.mxu2 }
 0x4a1   : > { %v1410_v27 = vsel %vm1130_vm13, %v1399_v26, -inf }
 0x4a2   : > { %1607 = vmatpush.bf16.msrb.mxu0 %v1592_v18 }
 0x4a5   : > { %1408 = vmax.xlane.f32.xlu2 %v1407_v8  ;;  %1303 = vadd.xlane.f32.xlu0 %v1302_v24 }
 0x4a8   : > { %v3058_v42 = vpop.f32.mrf.mxu2 }
 0x4a9   : > { %v1413_v43 = vsel %vm1130_vm13, %v3058_v42, -inf }
 0x4ad   : > { %1309 = vadd.xlane.f32.xlu0 %v1308_v25 }
 0x4b0   : > { %v3078_v50 = vpop.f32.mrf.mxu2 }
 0x4b1   : > { %v1416_v51 = vsel %vm1130_vm13, %v3078_v50, -inf }
 0x4b5   : > { %1411 = vmax.xlane.f32.xlu0 %v1410_v27 }
 0x4bd   : > { %1414 = vmax.xlane.f32.xlu0 %v1413_v43 }
 0x4d1   : > { %1455 = vrot.lane.b32.xlu0 %v2951_v52, %s2538_s30 }
 0x4d9   : > { %1453 = vrot.lane.b32.xlu0 %v2954_v53, %s2538_s30 }
 0x4e1   : > { %1585 = vrot.lane.b32.xlu0 %v2954_v53, %s2539_s1 }
 0x4f8   : > { %v1541_v31 = vpop.xlane.xlu1 %1540 }
 0x4f9   : > { %v1551_v32 = vsub.f32 %v3021_v62, %v1541_v31 }
 0x4fb   : > { %v1555_v33 = vmul.f32 1.442695, %v1551_v32 }
 0x4fd   : > { %2438 = vpow2.f32 %v1555_v33 }
 0x500   : > { %v1544_v41 = vpop.xlane.xlu2 %1543 }
 0x501   : > { %v1552_v34 = vsub.f32 %v3030_v3, %v1544_v41  ;;  %v1307_v3 = vpop.xlane.xlu1 %1306 }
 0x503   : > { %v3070_v35 = vpop.eup %2438  ;;  %v1557_v37 = vmul.f32 1.442695, %v1552_v34 }
 0x504   : > { %v1563_v38 = vsel %vm1130_vm13, %v3070_v35, 0.0 }
 0x505   : > { %2440 = vpow2.f32 %v1557_v37  ;;  %1564 = vadd.xlane.f32.xlu1 %v1563_v38 }
 0x508   : > { %v1547_v39 = vpop.xlane.xlu2 %1546 }
 0x50b   : > { %v3074_v53 = vpop.eup %2440 }
 0x50c   : > { %v1566_v45 = vsel %vm1130_vm13, %v3074_v53, 0.0 }
 0x50d   : > { %1567 = vadd.xlane.f32.xlu1 %v1566_v45 }
 0x510   : > { %v1301_v46 = vpop.xlane.xlu2 %1300  ;;  %v1550_v47 = vpop.xlane.xlu0 %1549 }
 0x511   : > { %2442 = vrcp.f32 %v1301_v46  ;;  %v1554_v17 = vsub.f32 %v3048_v14, %v1550_v47 }
 0x515   : > { %1417 = vmax.xlane.f32.xlu1 %v1416_v51 }
 0x517   : > { %v2443_v44 = vpop.eup %2442 }
 0x518   : > { %v1409_v54 = vpop.xlane.xlu2 %1408  ;;  %v1304_v57 = vpop.xlane.xlu0 %1303  ;;  %v1315_v62 = vmul.f32 %v2443_v44, %v3043_v55 }
 0x519   : > { %v1419_v40 = vsub.f32 %v1397_v23, %v1409_v54  ;;  %2444 = vrcp.f32 %v1304_v57 }
 0x51b   : > { %v1423_v58 = vmul.f32 1.442695, %v1419_v40 }
 0x51d   : > { %2446 = vpow2.f32 %v1423_v58 }
 0x51f   : > { %v2445_v61 = vpop.eup %2444 }
 0x520   : > { %v1316_v28 = vmul.f32 %v2445_v61, %v2435_v21  ;;  %v1310_v63 = vpop.xlane.xlu0 %1309  ;;  %v1553_v21 = vsub.f32 %v3039_v9, %v1547_v39 }
 0x521   : > { %2448 = vrcp.f32 %v1310_v63 }
 0x522   : > { %v1319_v0 = vpack.c.bf16 %v1316_v28, %v1315_v62  ;;  %2450 = vrcp.f32 %v1307_v3  ;;  %v1559_v23 = vmul.f32 1.442695, %v1553_v21  ;;  %v2288_v21 = vld [vmem:[%s3268_s9] sm:$0xff] }
 0x523   : > { %v3083_v2 = vpop.eup %2446 }
 0x524   : > { %2207 = vmatmul.msk.bf16.vlgmr.msra.gmra.mxu0 %vm1130_vm13, %v1319_v0  ;;  %v1431_v1 = vsel %vm1130_vm13, %v3083_v2, 0.0 }
 0x525   : > { %1432 = vadd.xlane.f32.xlu2 %v1431_v1 }
 0x527   : > { %v2449_v6 = vpop.eup %2448 }
 0x528   : > { %v1412_v4 = vpop.xlane.xlu0 %1411  ;;  %v2451_v29 = vpop.eup %2450  ;;  %v1318_v10 = vmul.f32 %v2449_v6, %v2437_v19 }
 0x529   : > { %v1420_v5 = vsub.f32 %v1399_v26, %v1412_v4  ;;  %v1317_v11 = vmul.f32 %v2451_v29, %v3027_v56  ;;  %v1561_v56 = vmul.f32 1.442695, %v1554_v17 }
 0x52b   : > { %v1425_v22 = vmul.f32 1.442695, %v1420_v5  ;;  %v1320_v59 = vpack.c.bf16 %v1318_v10, %v1317_v11 }
 0x52d   : > { %2452 = vpow2.f32 %v1425_v22 }
 0x530   : > { %v1415_v13 = vpop.xlane.xlu0 %1414 }
 0x531   : > { %v1421_v15 = vsub.f32 %v3058_v42, %v1415_v13 }
 0x533   : > { %v2453_v48 = vpop.eup %2452  ;;  %v1427_v16 = vmul.f32 1.442695, %v1421_v15 }
 0x534   : > { %2208 = vmatmul.msk.bf16.gmra.mxu0 %vm1130_vm13, %v1320_v59  ;;  %v1434_v55 = vsel %vm1130_vm13, %v2453_v48, 0.0 }
 0x535   : > { %1435 = vadd.xlane.f32.xlu1 %v1434_v55  ;;  %2454 = vpow2.f32 %v1427_v16 }
 0x536   : > { %2456 = vpow2.f32 %v1561_v56 }
 0x537   : > { %2458 = vpow2.f32 %v1559_v23 }
 0x53b   : > { %v3097_v18 = vpop.eup %2454 }
 0x53c   : > { %v1437_v20 = vsel %vm1130_vm13, %v3097_v18, 0.0 }
 0x53d   : > { %1589 = vrot.lane.b32.xlu2 %v2947_v36, %s2539_s1  ;;  %v2457_v36 = vpop.eup %2456 }
 0x53e   : > { %v2459_v8 = vpop.eup %2458 }
 0x53f   : > { %v1569_v14 = vsel %vm1130_vm13, %v2459_v8, 0.0 }
 0x543   : > { %v1456_v26 = vpop.permute.xlu0 %1455 }
 0x544   : > { %1477 = vmatpush.bf16.msrb.mxu1 %v1456_v26 }
 0x54b   : > { %v1454_v9 = vpop.permute.xlu0 %1453 }
 0x54c   : > { %1478 = vmatpush.bf16.msrb.mxu1 %v1454_v9 }
 0x54e   : > { %1587 = vrot.lane.b32.xlu1 %v2951_v52, %s2539_s1  ;;  %v1572_v52 = vsel %vm1130_vm13, %v2457_v36, 0.0 }
 0x553   : > { %v1586_v61 = vpop.permute.xlu0 %1585 }
 0x566   : > { %1438 = vadd.xlane.f32.xlu2 %v1437_v20 }
 0x56e   : > { %1573 = vadd.xlane.f32.xlu2 %v1572_v52 }
 0x578   : > { %v1565_v24 = vpop.xlane.xlu1 %1564  ;;  %1570 = vadd.xlane.f32.xlu1 %v1569_v14 }
 0x580   : > { %v1568_v19 = vpop.xlane.xlu1 %1567 }
 0x588   : > { %v1418_v25 = vpop.xlane.xlu1 %1417 }
 0x589   : > { %v1422_v27 = vsub.f32 %v3078_v50, %v1418_v25 }
 0x58b   : > { %v1429_v42 = vmul.f32 1.442695, %v1422_v27 }
 0x58d   : > { %2460 = vpow2.f32 %v1429_v42 }
 0x593   : > { %v2461_v43 = vpop.eup %2460 }
 0x594   : > { %v1440_v30 = vsel %vm1130_vm13, %v2461_v43, 0.0 }
 0x595   : > { %1441 = vadd.xlane.f32.xlu0 %v1440_v30 }
 0x598   : > { %v1433_v31 = vpop.xlane.xlu2 %1432 }
 0x599   : > { %2462 = vrcp.f32 %v1433_v31 }
 0x59f   : > { %v2463_v38 = vpop.eup %2462 }
 0x5a0   : > { %v1590_v32 = vpop.permute.xlu2 %1589  ;;  %v1447_v45 = vmul.f32 %v2463_v38, %v3083_v2 }
 0x5a1   : > { %v1348_v33 = vpop.f32.mrf.mxu0  ;;  %1608 = vmatpush.bf16.msrb.mxu0 %v1590_v32 }
 0x5a8   : > { %v1436_v41 = vpop.xlane.xlu1 %1435 }
 0x5a9   : > { %2464 = vrcp.f32 %v1436_v41  ;;  %v1350_v34 = vpop.f32.mrf.mxu0 }
 0x5aa   : > { %v2378_v37 = vpack.i.bf16 %v1350_v34, %v1348_v33  ;;  %2466 = vrcp.f32 %v1568_v19 }
 0x5ab   : > { %2468 = vrcp.f32 %v1565_v24 }
 0x5ac   : > { %2379 = vrot.lane.b32.xlu0 %v2378_v37, %s2540_s21 }
 0x5af   : > { %v2465_v39 = vpop.eup %2464 }
 0x5b0   : > { %v1448_v46 = vmul.f32 %v2465_v39, %v2453_v48  ;;  %v2467_v57 = vpop.eup %2466 }
 0x5b1   : > { %v1353_v47 = vpop.f32.mrf.mxu0  ;;  %v2469_v58 = vpop.eup %2468  ;;  %v1580_v44 = vmul.f32 %v2467_v57, %v3074_v53 }
 0x5b2   : > { %v1451_v50 = vpack.c.bf16 %v1448_v46, %v1447_v45  ;;  %v1579_v62 = vmul.f32 %v2469_v58, %v3070_v35 }
 0x5b4   : > { %2211 = vmatmul.msk.bf16.vlgmr.msrb.gmra.mxu1 %vm1130_vm13, %v1451_v50  ;;  %v1583_v28 = vpack.c.bf16 %v1580_v44, %v1579_v62 }
 0x5b9   : > { %v1355_v51 = vpop.f32.mrf.mxu0 }
 0x5ba   : > { %v2393_v54 = vpack.i.bf16 %v1355_v51, %v1353_v47 }
 0x5bc   : > { %2394 = vrot.lane.b32.xlu0 %v2393_v54, %s2540_s21 }
 0x5c0   : > { %v1588_v40 = vpop.permute.xlu1 %1587 }
 0x5c1   : > { %1609 = vmatpush.bf16.msrb.mxu0 %v1588_v40 }
 0x5c5   : > { %1610 = vmatpush.bf16.msrb.mxu0 %v1586_v61 }
 0x5c8   : > { %2215 = vmatmul.msk.bf16.vlgmr.msrb.gmra.mxu0 %vm1130_vm13, %v1583_v28 }
 0x5d9   : > { %v1439_v63 = vpop.xlane.xlu2 %1438 }
 0x5e1   : > { %v1574_v0 = vpop.xlane.xlu2 %1573 }
 0x5e2   : > { %2470 = vrcp.f32 %v1574_v0 }
 0x5e8   : > { %v2471_v3 = vpop.eup %2470 }
 0x5e9   : > { %v1582_v5 = vmul.f32 %v2471_v3, %v2457_v36 }
 0x5eb   : > { %v1571_v2 = vpop.xlane.xlu1 %1570 }
 0x5ec   : > { %2472 = vrcp.f32 %v1571_v2  ;;  %v975_v2 = vld [vmem:[%s973_s18 + $0x8] sm:$0xff] }
 0x5ed   : > { %2474 = vrcp.f32 %v1439_v63 }
 0x5f2   : > { %v2473_v1 = vpop.eup %2472 }
 0x5f3   : > { %v1581_v4 = vmul.f32 %v2473_v1, %v2459_v8  ;;  %v2475_v35 = vpop.eup %2474 }
 0x5f4   : > { %v1449_v29 = vmul.f32 %v2475_v35, %v3097_v18  ;;  %v2289_v18 = vld [vmem:[%s3268_s9 + $0x8] sm:$0xff] }
 0x5f5   : > { %v1584_v6 = vpack.c.bf16 %v1582_v5, %v1581_v4  ;;  %1718 = vmatpush.bf16.msra.mxu2 %v2289_v18 }
 0x5f7   : > { %2216 = vmatmul.msk.bf16.gmra.mxu0 %vm1130_vm13, %v1584_v6  ;;  %v2543_v6 = vmov 32.0  }
 0x5f9   : > { %1719 = vmatpush.bf16.msra.mxu2 %v2288_v21 }
 0x608   : > { %v1442_v53 = vpop.xlane.xlu0 %1441 }
 0x609   : > { %2476 = vrcp.f32 %v1442_v53  ;;  %v976_v53 = vld [vmem:[%s973_s18 + $0x10] sm:$0xff] }
 0x60a   : > { %2478 = vrcp.f32 %v2543_v6 }
 0x60f   : > { %v2477_v22 = vpop.eup %2476 }
 0x610   : > { %v1450_v10 = vmul.f32 %v2477_v22, %v2461_v43 }
 0x612   : > { %v1452_v11 = vpack.c.bf16 %v1450_v10, %v1449_v29  ;;  %v2479_v10 = vpop.eup %2478 }
 0x613   : > { %vm1754_vm1 = vweird.f32 %v2479_v10 }
 0x614   : > { %2212 = vmatmul.msk.bf16.gmra.mxu1 %vm1130_vm13, %v1452_v11 }
 0x61e   : > { %v2380_v8 = vpop.permute.xlu0 %2379 }
 0x61f   : > { %v2382_v14 = vunpack.i.h.bf16 %v2380_v8  ;;  %v2381_v24 = vunpack.i.l.bf16 %v2380_v8 }
 0x621   : > { %v1671_v42 = vsel %vm1092_vm0, %v3025_v49, %v2382_v14  ;;  %v1670_v9 = vsel %vm1092_vm0, %v3019_v60, %v2381_v24 }
 0x62e   : > { %v2395_v37 = vpop.permute.xlu0 %2394 }
 0x62f   : > { %v2397_v38 = vunpack.i.h.bf16 %v2395_v37  ;;  %v2396_v49 = vunpack.i.l.bf16 %v2395_v37  ;;  %v2291_v37 = vld [vmem:[%s3272_s13 + $0x8] sm:$0xff] }
 0x630   : > { %1880 = vmatpush.bf16.msra.mxu1 %v2291_v37  ;;  %v2299_v37 = vld [vmem:[%s3274_s15 + $0x38] sm:$0xff] }
 0x631   : > { %v1480_v59 = vpop.f32.mrf.mxu1  ;;  %v1673_v47 = vsel %vm1092_vm0, %v3045_v12, %v2397_v38  ;;  %v1672_v50 = vsel %vm1092_vm0, %v3036_v7, %v2396_v49  ;;  %v2409_v12 = vld [vmem:[%s3269_s10] ss:$0 sm:$0xff]  ;;  %1999 = vmatpush.bf16.msra.mxu3 %v2299_v37 }
 0x632   : > { %v974_v7 = vld [vmem:[%s973_s18] sm:$0xff] }
 0x639   : > { %v1482_v48 = vpop.f32.mrf.mxu1 }
 0x63a   : > { %v2383_v55 = vpack.i.bf16 %v1482_v48, %v1480_v59  ;;  %v1750_v59 = vmul.f32 32.0, %v2479_v10  ;;  %v977_v48 = vld [vmem:[%s973_s18 + $0x18] sm:$0xff] }
 0x63c   : > { %2384 = vrot.lane.b32.xlu1 %v2383_v55, %s2541_s23 }
 0x645   : > { %v1612_v13 = vpop.f32.mrf.mxu0 }
 0x64d   : > { %v1614_v15 = vpop.f32.mrf.mxu0 }
 0x64e   : > { %v2388_v16 = vpack.i.bf16 %v1614_v15, %v1612_v13 }
 0x650   : > { %2389 = vrot.lane.b32.xlu2 %v2388_v16, %s2542_s25  ;;  %v1751_v16 = vsub.f32 1.0, %v1750_v59 }
 0x674   : > { %v1617_v17 = vpop.f32.mrf.mxu0 }
 0x67c   : > { %v1619_v56 = vpop.f32.mrf.mxu0 }
 0x67d   : > { %v2403_v20 = vpack.i.bf16 %v1619_v56, %v1617_v17  ;;  %v1752_v56 = vmul.f32 %v2479_v10, %v1751_v16 }
 0x67f   : > { %2404 = vrot.lane.b32.xlu2 %v2403_v20, %s2542_s25  ;;  %v1753_v20 = vadd.f32 %v2479_v10, %v1752_v56 }
 0x681   : > { %v3160_v18 = vsel %vm1754_vm1, %v2479_v10, %v1753_v20 }
 0x691   : > { %v1485_v36 = vpop.f32.mrf.mxu1 }
 0x699   : > { %v1487_v23 = vpop.f32.mrf.mxu1 }
 0x69a   : > { %v2398_v52 = vpack.i.bf16 %v1487_v23, %v1485_v36 }
 0x69c   : > { %2399 = vrot.lane.b32.xlu0 %v2398_v52, %s2541_s23 }
 0x6aa   : > { %v2390_v19 = vpop.permute.xlu2 %2389 }
 0x6ab   : > { %v2392_v43 = vunpack.i.h.bf16 %v2390_v19  ;;  %v2391_v30 = vunpack.i.l.bf16 %v2390_v19 }
 0x6ae   : > { %v2385_v25 = vpop.permute.xlu1 %2384 }
 0x6af   : > { %v2387_v26 = vunpack.i.h.bf16 %v2385_v25  ;;  %v2386_v27 = vunpack.i.l.bf16 %v2385_v25 }
 0x6b1   : > { %v1675_v31 = vsel %vm1674_vm14, %v1670_v9, %v2386_v27  ;;  %v1676_v32 = vsel %vm1674_vm14, %v1671_v42, %v2387_v26 }
 0x6b2   : > { %v1680_v33 = vsel %vm1679_vm15, %v1675_v31, %v2391_v30  ;;  %v1681_v41 = vsel %vm1679_vm15, %v1676_v32, %v2392_v43 }
 0x6b3   : > { %v1684_v34 = vpack.c.bf16 %v1681_v41, %v1680_v33 }
 0x6b5   : > { %2225 = vmatmul.msk.bf16.vlgmr.msra.gmra.mxu2 %vm1016_vm12, %v1684_v34 }
 0x6d9   : > { %v2405_v39 = vpop.permute.xlu2 %2404 }
 0x6da   : > { %v2407_v51 = vunpack.i.h.bf16 %v2405_v39  ;;  %v2406_v54 = vunpack.i.l.bf16 %v2405_v39  ;;  %v2290_v39 = vld [vmem:[%s3272_s13] sm:$0xff] }
 0x6db   : > { %1881 = vmatpush.bf16.msra.mxu1 %v2290_v39  ;;  %v2294_v39 = vld [vmem:[%s3274_s15 + $0x10] sm:$0xff] }
 0x70e   : > { %v2400_v60 = vpop.permute.xlu0 %2399 }
 0x70f   : > { %v2402_v45 = vunpack.i.h.bf16 %v2400_v60  ;;  %v2401_v46 = vunpack.i.l.bf16 %v2400_v60 }
 0x711   : > { %v1677_v57 = vsel %vm1674_vm14, %v1672_v50, %v2401_v46  ;;  %v1678_v40 = vsel %vm1674_vm14, %v1673_v47, %v2402_v45 }
 0x712   : > { %v1682_v58 = vsel %vm1679_vm15, %v1677_v57, %v2406_v54  ;;  %v1683_v44 = vsel %vm1679_vm15, %v1678_v40, %v2407_v51 }
 0x713   : > { %v1685_v61 = vpack.c.bf16 %v1683_v44, %v1682_v58 }
 0x715   : > { %2226 = vmatmul.msk.bf16.gmra.mxu2 %vm1016_vm12, %v1685_v61 }
 0x738   : > { %v1721_v62 = vpop.f32.mrf.mxu2 }
 0x739   : > { %v1722_v28 = vadd.f32 %v2409_v12, %v1721_v62 }
 0x73b   : > { %v3144_v63 = vadd.f32 %v1722_v28, %v974_v7 }
 0x73d   : > { %v1737_v0 = vsel %vm1016_vm12, %v3144_v63, 0.0 }
 0x73e   : > { %1738 = vadd.xlane.f32.xlu1 %v1737_v0  ;;  %v2410_v0 = vld [vmem:[%s3270_s11] ss:$0 sm:$0xff] }
 0x740   : > { %v1723_v3 = vpop.f32.mrf.mxu2 }
 0x741   : > { %v1724_v1 = vadd.f32 %v2409_v12, %v1723_v3 }
 0x743   : > { %v3148_v4 = vadd.f32 %v1724_v1, %v975_v2 }
 0x745   : > { %v1740_v5 = vsel %vm1016_vm12, %v3148_v4, 0.0 }
 0x746   : > { %1741 = vadd.xlane.f32.xlu0 %v1740_v5  ;;  %v2411_v5 = vld [vmem:[%s3271_s12] ss:$0 sm:$0xff] }
 0x798   : > { %v1726_v35 = vpop.f32.mrf.mxu2 }
 0x799   : > { %v1727_v22 = vadd.f32 %v2409_v12, %v1726_v35 }
 0x79b   : > { %v3152_v29 = vadd.f32 %v1727_v22, %v976_v53 }
 0x79d   : > { %v1743_v11 = vsel %vm1016_vm12, %v3152_v29, 0.0 }
 0x79e   : > { %1744 = vadd.xlane.f32.xlu2 %v1743_v11 }
 0x7a0   : > { %v1728_v55 = vpop.f32.mrf.mxu2 }
 0x7a1   : > { %v1729_v13 = vadd.f32 %v2409_v12, %v1728_v55 }
 0x7a3   : > { %v3156_v15 = vadd.f32 %v1729_v13, %v977_v48 }
 0x7a5   : > { %v1746_v17 = vsel %vm1016_vm12, %v3156_v15, 0.0 }
 0x7a6   : > { %1747 = vadd.xlane.f32.xlu1 %v1746_v17 }
 0x7b1   : > { %v1739_v21 = vpop.xlane.xlu1 %1738 }
 0x7b2   : > { %v1756_v36 = vmul.f32 %v3160_v18, %v1739_v21 }
 0x7b4   : > { %v1760_v23 = vsub.f32 %v3144_v63, %v1756_v36 }
 0x7b6   : > { %v1764_v52 = vmul.f32 %v1760_v23, %v1760_v23 }
 0x7b8   : > { %v1768_v8 = vsel %vm1016_vm12, %v1764_v52, 0.0 }
 0x7b9   : > { %v1742_v14 = vpop.xlane.xlu0 %1741  ;;  %1769 = vadd.xlane.f32.xlu2 %v1768_v8 }
 0x7ba   : > { %v1757_v24 = vmul.f32 %v3160_v18, %v1742_v14 }
 0x7bc   : > { %v1761_v19 = vsub.f32 %v3148_v4, %v1757_v24 }
 0x7be   : > { %v1765_v25 = vmul.f32 %v1761_v19, %v1761_v19 }
 0x7c0   : > { %v1771_v26 = vsel %vm1016_vm12, %v1765_v25, 0.0 }
 0x7c1   : > { %1772 = vadd.xlane.f32.xlu0 %v1771_v26 }
 0x811   : > { %v1745_v27 = vpop.xlane.xlu2 %1744 }
 0x812   : > { %v1758_v42 = vmul.f32 %v3160_v18, %v1745_v27 }
 0x814   : > { %v3170_v9 = vsub.f32 %v3152_v29, %v1758_v42 }
 0x816   : > { %v1766_v43 = vmul.f32 %v3170_v9, %v3170_v9 }
 0x818   : > { %v1774_v30 = vsel %vm1016_vm12, %v1766_v43, 0.0 }
 0x819   : > { %1775 = vadd.xlane.f32.xlu1 %v1774_v30  ;;  %v1748_v31 = vpop.xlane.xlu1 %1747 }
 0x81a   : > { %v1759_v32 = vmul.f32 %v3160_v18, %v1748_v31 }
 0x81c   : > { %v3177_v33 = vsub.f32 %v3156_v15, %v1759_v32 }
 0x81e   : > { %v1767_v41 = vmul.f32 %v3177_v33, %v3177_v33 }
 0x820   : > { %v1777_v34 = vsel %vm1016_vm12, %v1767_v41, 0.0 }
 0x821   : > { %1778 = vadd.xlane.f32.xlu2 %v1777_v34 }
 0x82c   : > { %v1770_v38 = vpop.xlane.xlu2 %1769 }
 0x82d   : > { %v1780_v49 = vmul.f32 %v1770_v38, %v3160_v18  ;;  %v2296_v38 = vld [vmem:[%s3274_s15 + $0x20] sm:$0xff] }
 0x82f   : > { %v1784_v60 = vadd.f32 1e-05, %v1780_v49  ;;  %v2295_v49 = vld [vmem:[%s3274_s15 + $0x18] sm:$0xff] }
 0x831   : > { %2480 = vrsqrt.f32 %v1784_v60  ;;  %vm1794_vm3 = vweird.f32 %v1784_v60 }
 0x834   : > { %v1773_v45 = vpop.xlane.xlu0 %1772 }
 0x835   : > { %v1781_v46 = vmul.f32 %v1773_v45, %v3160_v18  ;;  %v2412_v45 = vld [vmem:[%s3273_s14] ss:$0 sm:$0xff] }
 0x837   : > { %v2481_v47 = vpop.eup %2480  ;;  %v1785_v50 = vadd.f32 1e-05, %v1781_v46  ;;  %v2292_v46 = vld [vmem:[%s3274_s15] sm:$0xff] }
 0x838   : > { %v1789_v51 = vmul.f32 %v2481_v47, %v1784_v60  ;;  %vm1795_vm2 = vweird.f32 %v2481_v47  ;;  %v2293_v60 = vld [vmem:[%s3274_s15 + $0x8] sm:$0xff] }
 0x839   : > { %2482 = vrsqrt.f32 %v1785_v50  ;;  %vm1796_vm4 = vmor %vm1794_vm3, %vm1795_vm2  ;;  %vm1804_vm6 = vweird.f32 %v1785_v50 }
 0x83a   : > { %v1790_v54 = vmul.f32 %v2481_v47, %v1789_v51 }
 0x83c   : > { %v1791_v57 = vmul.f32 0.5, %v1790_v54 }
 0x83e   : > { %v1792_v40 = vsub.f32 1.5, %v1791_v57 }
 0x83f   : > { %v2483_v58 = vpop.eup %2482 }
 0x840   : > { %v1793_v44 = vmul.f32 %v2481_v47, %v1792_v40  ;;  %v1799_v61 = vmul.f32 %v2483_v58, %v1785_v50  ;;  %vm1805_vm5 = vweird.f32 %v2483_v58 }
 0x841   : > { %vm1806_vm7 = vmor %vm1804_vm6, %vm1805_vm5 }
 0x842   : > { %v1800_v12 = vmul.f32 %v2483_v58, %v1799_v61  ;;  %v1797_v7 = vsel %vm1796_vm4, %v2481_v47, %v1793_v44 }
 0x843   : > { %v1828_v2 = vmul.f32 %v1797_v7, %v1760_v23 }
 0x844   : > { %v1801_v62 = vmul.f32 0.5, %v1800_v12 }
 0x845   : > { %v1835_v6 = vmul.f32 %v2410_v0, %v1828_v2 }
 0x846   : > { %v1802_v28 = vsub.f32 1.5, %v1801_v62 }
 0x847   : > { %v1842_v22 = vadd.f32 %v2411_v5, %v1835_v6 }
 0x848   : > { %v1803_v3 = vmul.f32 %v2483_v58, %v1802_v28 }
 0x84a   : > { %v1807_v1 = vsel %vm1806_vm7, %v2483_v58, %v1803_v3 }
 0x84b   : > { %v1829_v53 = vmul.f32 %v1807_v1, %v1761_v19 }
 0x84d   : > { %v1836_v35 = vmul.f32 %v2410_v0, %v1829_v53 }
 0x84f   : > { %v1843_v10 = vadd.f32 %v2411_v5, %v1836_v35 }
 0x851   : > { %v1846_v11 = vpack.c.bf16 %v1843_v10, %v1842_v22 }
 0x853   : > { %2235 = vmatmul.msk.bf16.vlgmr.msra.gmra.mxu1 %vm1016_vm12, %v1846_v11 }
 0x88c   : > { %v1776_v59 = vpop.xlane.xlu1 %1775 }
 0x88d   : > { %v1782_v48 = vmul.f32 %v1776_v59, %v3160_v18 }
 0x88f   : > { %v1786_v55 = vadd.f32 1e-05, %v1782_v48 }
 0x891   : > { %2484 = vrsqrt.f32 %v1786_v55  ;;  %vm1814_vm9 = vweird.f32 %v1786_v55 }
 0x894   : > { %v1779_v13 = vpop.xlane.xlu2 %1778 }
 0x895   : > { %v1783_v16 = vmul.f32 %v1779_v13, %v3160_v18 }
 0x897   : > { %v2485_v17 = vpop.eup %2484  ;;  %v1787_v56 = vadd.f32 1e-05, %v1783_v16 }
 0x898   : > { %v1809_v20 = vmul.f32 %v2485_v17, %v1786_v55  ;;  %vm1815_vm8 = vweird.f32 %v2485_v17 }
 0x899   : > { %2486 = vrsqrt.f32 %v1787_v56  ;;  %vm1816_vm10 = vmor %vm1814_vm9, %vm1815_vm8  ;;  %vm1824_vm0 = vweird.f32 %v1787_v56 }
 0x89a   : > { %v1810_v21 = vmul.f32 %v2485_v17, %v1809_v20 }
 0x89c   : > { %v1811_v36 = vmul.f32 0.5, %v1810_v21 }
 0x89e   : > { %v1812_v23 = vsub.f32 1.5, %v1811_v36 }
 0x89f   : > { %v2487_v52 = vpop.eup %2486 }
 0x8a0   : > { %v1813_v8 = vmul.f32 %v2485_v17, %v1812_v23  ;;  %v1819_v14 = vmul.f32 %v2487_v52, %v1787_v56  ;;  %vm1825_vm11 = vweird.f32 %v2487_v52 }
 0x8a1   : > { %vm1826_vm13 = vmor %vm1824_vm0, %vm1825_vm11 }
 0x8a2   : > { %v1820_v24 = vmul.f32 %v2487_v52, %v1819_v14  ;;  %v1817_v19 = vsel %vm1816_vm10, %v2485_v17, %v1813_v8 }
 0x8a3   : > { %v1830_v18 = vmul.f32 %v1817_v19, %v3170_v9  ;;  %v2298_v9 = vld [vmem:[%s3274_s15 + $0x30] sm:$0xff] }
 0x8a4   : > { %v1821_v25 = vmul.f32 0.5, %v1820_v24  ;;  %2000 = vmatpush.bf16.msra.mxu3 %v2298_v9 }
 0x8a5   : > { %v1837_v30 = vmul.f32 %v2410_v0, %v1830_v18 }
 0x8a6   : > { %v1822_v26 = vsub.f32 1.5, %v1821_v25 }
 0x8a7   : > { %v1844_v32 = vadd.f32 %v2411_v5, %v1837_v30  ;;  %v2413_v30 = vld [vmem:[%s3275_s16] ss:$0 sm:$0xff] }
 0x8a8   : > { %v1823_v27 = vmul.f32 %v2487_v52, %v1822_v26 }
 0x8aa   : > { %v1827_v42 = vsel %vm1826_vm13, %v2487_v52, %v1823_v27 }
 0x8ab   : > { %v1831_v43 = vmul.f32 %v1827_v42, %v3177_v33  ;;  %v2297_v33 = vld [vmem:[%s3274_s15 + $0x28] sm:$0xff] }
 0x8ac   : > { %2001 = vmatpush.bf16.msra.mxu3 %v2297_v33 }
 0x8ad   : > { %v1838_v31 = vmul.f32 %v2410_v0, %v1831_v43 }
 0x8af   : > { %v1845_v41 = vadd.f32 %v2411_v5, %v1838_v31 }
 0x8b0   : > { %2002 = vmatpush.bf16.msra.mxu3 %v2296_v38 }
 0x8b1   : > { %v1847_v34 = vpack.c.bf16 %v1845_v41, %v1844_v32 }
 0x8b3   : > { %2236 = vmatmul.msk.bf16.gmra.mxu1 %vm1016_vm12, %v1847_v34 }
 0x8b4   : > { %2003 = vmatpush.bf16.msra.mxu3 %v2295_v49 }
 0x8b8   : > { %2004 = vmatpush.bf16.msra.mxu3 %v2294_v39 }
 0x8bc   : > { %2005 = vmatpush.bf16.msra.mxu3 %v2293_v60 }
 0x8c0   : > { %2006 = vmatpush.bf16.msra.mxu3 %v2292_v46 }
 0x8d0   : > { %v1883_v47 = vpop.f32.mrf.mxu1 }
 0x8d1   : > { %v1884_v50 = vadd.f32 %v2412_v45, %v1883_v47 }
 0x8d3   : > { %v1893_v51 = vmul.f32 %v1884_v50, %v1884_v50 }
 0x8d5   : > { %v1897_v54 = vmul.f32 %v1893_v51, %v1884_v50 }
 0x8d7   : > { %v1901_v57 = vmul.f32 0.044715, %v1897_v54 }
 0x8d8   : > { %v1885_v40 = vpop.f32.mrf.mxu1 }
 0x8d9   : > { %v1905_v58 = vadd.f32 %v1901_v57, %v1884_v50  ;;  %v1886_v44 = vadd.f32 %v2412_v45, %v1885_v40 }
 0x8db   : > { %v1909_v61 = vmul.f32 0.7978846, %v1905_v58  ;;  %v1894_v12 = vmul.f32 %v1886_v44, %v1886_v44 }
 0x8dd   : > { %v1898_v7 = vmul.f32 %v1894_v12, %v1886_v44  ;;  %2488 = vtanh.f32 %v1909_v61 }
 0x8df   : > { %v1902_v62 = vmul.f32 0.044715, %v1898_v7 }
 0x8e1   : > { %v1906_v28 = vadd.f32 %v1902_v62, %v1886_v44 }
 0x8e3   : > { %v1910_v0 = vmul.f32 0.7978846, %v1906_v28  ;;  %v2489_v2 = vpop.eup %2488 }
 0x8e4   : > { %v1917_v3 = vadd.f32 1.0, %v2489_v2 }
 0x8e5   : > { %2490 = vtanh.f32 %v1910_v0 }
 0x8e6   : > { %v1921_v5 = vmul.f32 0.5, %v1917_v3 }
 0x8e8   : > { %v1925_v35 = vmul.f32 %v1921_v5, %v1884_v50 }
 0x8eb   : > { %v2491_v1 = vpop.eup %2490 }
 0x8ec   : > { %v1918_v6 = vadd.f32 1.0, %v2491_v1 }
 0x8ee   : > { %v1922_v53 = vmul.f32 0.5, %v1918_v6 }
 0x8f0   : > { %v1926_v22 = vmul.f32 %v1922_v53, %v1886_v44 }
 0x8f2   : > { %v1929_v10 = vpack.c.bf16 %v1926_v22, %v1925_v35 }
 0x8f4   : > { %2007 = vmatmul.bf16.vlgmr.msra.gmra.mxu3 %v1929_v10 }
 0x930   : > { %v1888_v11 = vpop.f32.mrf.mxu1 }
 0x931   : > { %v1889_v59 = vadd.f32 %v2412_v45, %v1888_v11 }
 0x933   : > { %v1895_v48 = vmul.f32 %v1889_v59, %v1889_v59 }
 0x935   : > { %v1899_v55 = vmul.f32 %v1895_v48, %v1889_v59 }
 0x937   : > { %v1903_v13 = vmul.f32 0.044715, %v1899_v55 }
 0x938   : > { %v1890_v16 = vpop.f32.mrf.mxu1 }
 0x939   : > { %v1907_v17 = vadd.f32 %v1903_v13, %v1889_v59  ;;  %v1891_v56 = vadd.f32 %v2412_v45, %v1890_v16 }
 0x93b   : > { %v1896_v20 = vmul.f32 %v1891_v56, %v1891_v56  ;;  %v1911_v21 = vmul.f32 0.7978846, %v1907_v17 }
 0x93d   : > { %v1900_v36 = vmul.f32 %v1896_v20, %v1891_v56  ;;  %2492 = vtanh.f32 %v1911_v21 }
 0x93f   : > { %v1904_v23 = vmul.f32 0.044715, %v1900_v36 }
 0x941   : > { %v1908_v52 = vadd.f32 %v1904_v23, %v1891_v56 }
 0x943   : > { %v1912_v8 = vmul.f32 0.7978846, %v1908_v52  ;;  %v2493_v14 = vpop.eup %2492 }
 0x944   : > { %v1919_v24 = vadd.f32 1.0, %v2493_v14 }
 0x945   : > { %2494 = vtanh.f32 %v1912_v8 }
 0x946   : > { %v1923_v26 = vmul.f32 0.5, %v1919_v24 }
 0x948   : > { %v1927_v27 = vmul.f32 %v1923_v26, %v1889_v59 }
 0x94b   : > { %v2495_v19 = vpop.eup %2494 }
 0x94c   : > { %v1920_v25 = vadd.f32 1.0, %v2495_v19 }
 0x94e   : > { %v1924_v18 = vmul.f32 0.5, %v1920_v25 }
 0x950   : > { %v1928_v42 = vmul.f32 %v1924_v18, %v1891_v56 }
 0x952   : > { %v1930_v43 = vpack.c.bf16 %v1928_v42, %v1927_v27 }
 0x954   : > { %2012 = vmatmul.bf16.gmra.mxu3 %v1930_v43 }
 0x977   : > { %v2008_v31 = vpop.f32.mrf.mxu3 }
 0x978   : > { %v2009_v32 = vadd.f32 %v2413_v30, %v2008_v31 }
 0x97a   : > { %v2018_v41 = vadd.f32 %v2009_v32, %v3144_v63 }
 0x97c   : > { %2022 = vst.msk [vmem:[%s2675_s0] sm:$0xff] %vm1016_vm12, %v2018_v41 }
 0x97f   : > { %v2010_v34 = vpop.f32.mrf.mxu3 }
 0x980   : > { %v2011_v37 = vadd.f32 %v2413_v30, %v2010_v34 }
 0x982   : > { %v2019_v9 = vadd.f32 %v2011_v37, %v3148_v4 }
 0x984   : > { %2023 = vst.msk [vmem:[%s2675_s0 + $0x8] sm:$0xff] %vm1016_vm12, %v2019_v9 }
 0x9d7   : > { %v2013_v33 = vpop.f32.mrf.mxu3 }
 0x9d8   : > { %v2014_v38 = vadd.f32 %v2413_v30, %v2013_v33 }
 0x9da   : > { %v2020_v49 = vadd.f32 %v2014_v38, %v3152_v29 }
 0x9dc   : > { %2024 = vst.msk [vmem:[%s2675_s0 + $0x10] sm:$0xff] %vm1016_vm12, %v2020_v49 }
 0x9df   : > { %v2015_v39 = vpop.f32.mrf.mxu3 }
 0x9e0   : > { %v2016_v60 = vadd.f32 %v2413_v30, %v2015_v39 }
 0x9e2   : > { %v2021_v45 = vadd.f32 %v2016_v60, %v3156_v15 }
 0x9e4   : > { %2025 = vst.msk [vmem:[%s2675_s0 + $0x18] sm:$0xff] %vm1016_vm12, %v2021_v45 }
 0x9e5 PF: > { %s27_s28 = sadd.s32 1, %s2534_s28   ;;  %s3291_s24 = sld [smem:[#allocation5_spill]] }
 0x9e6   : > { %p24_p8 = scmp.ge.s32.totalorder %s27_s28, 6   ;;  %s3292_s25 = sld [smem:[#allocation6_spill]] }
 0x9e7   : > { %s3293_s26 = sld [smem:[#allocation7_spill]] }
 0x9e8   : > { %s3294_s27 = sld [smem:[#allocation8_spill]]  ;;  %26 = sbr.rel (!%p24_p8) target bundleno = 4 (0x4), region = 124 }

</bundles_post_ra>
